<compile_context>
chip_gen: v7x
topology: tpu7x:2x2x1
jax: 0.10.0
libtpu: 0.0.40
codegen_flags: <defaults>
</compile_context>

<pallas_src>
import functools
import math

import jax
import jax.numpy as jnp
import numpy as np
from jax import lax
from jax.experimental import pallas as pl
from jax.experimental.pallas import tpu as pltpu


def _adaptive_pool_matrix(in_size: int, out_size: int) -> np.ndarray:
    """P[o, i]: PyTorch adaptive_avg_pool1d semantics as a linear map out = P @ in."""
    P = np.zeros((out_size, in_size), dtype=np.float32)
    for o in range(out_size):
        start = (o * in_size) // out_size
        end = -(-((o + 1) * in_size) // out_size)  # ceil
        P[o, start:end] = 1.0 / (end - start)
    return P


def _conv1d_channels(g, w_ref, k, cloc, C):
    """Conv1d(1,1,k, zero pad, no bias) over each batch element's per-channel
    global sequence.  g: (R, 1) f32, one value per (batch, channel) row; the
    conv steps along rows and must not mix batch elements -- the hoisted
    cloc = row % C mask kills the batch boundaries."""
    pad = (k - 1) // 2
    acc = w_ref[0, pad] * g
    for j in range(k):
        d = j - pad
        if d == 0:
            continue
        rolled = jnp.roll(g, -d, axis=0)              # rolled[r] = g[r + d]
        valid = (cloc + d >= 0) & (cloc + d < C)
        acc = acc + w_ref[0, j] * jnp.where(valid, rolled, 0.0)
    return acc


def _conv1d_binmajor(M, w_ref, k, cloc, C):
    """Conv1d(1,1,k, zero pad, no bias) over each batch element's flattened
    (bin-major, channel-minor) local sequence, held as M[(b,c), bin].

    M: (R, nbins) f32.  Inside a bin the conv steps along channels (rows);
    crossing a bin boundary moves one lane over.  The shifted copies
    (M_right / M_left, with zeroed boundary lane) and the row-index mask are
    hoisted out of the k-tap loop -- no per-tap zero tiles.  Requires
    (k-1)//2 < C (checked in the wrapper)."""
    R, _ = M.shape
    pad = (k - 1) // 2
    zero_col = jnp.zeros((R, 1), M.dtype)
    M_right = jnp.concatenate([M[:, 1:], zero_col], axis=1)   # next bin, same channel
    M_left = jnp.concatenate([zero_col, M[:, :-1]], axis=1)   # previous bin
    acc = w_ref[0, pad] * M
    for j in range(k):
        d = j - pad
        if d == 0:
            continue
        if d > 0:
            in_row = jnp.roll(M, -d, axis=0)            # [r] -> M[r + d]
            wrap = jnp.roll(M_right, C - d, axis=0)     # [r] -> M_right[r + d - C]
            acc = acc + w_ref[0, j] * jnp.where(cloc < C - d, in_row, wrap)
        else:
            dd = -d
            in_row = jnp.roll(M, dd, axis=0)            # [r] -> M[r - dd]
            wrap = jnp.roll(M_left, dd - C, axis=0)     # [r] -> M_left[r - dd + C]
            acc = acc + w_ref[0, j] * jnp.where(cloc >= dd, in_row, wrap)
    return acc


def _mlca_kernel(x_ref, kt_ref, ku_ref, wl_ref, wg_ref, o_ref, *, k, local_weight, C):
    f32 = jnp.float32
    R, _ = x_ref.shape

    x2 = x_ref[...]                                   # (R, HW), io dtype, lane-dense
    xm = x2.astype(jnp.bfloat16)                      # explicit single bf16 MXU pass

    # 1) local adaptive avg-pool: canonical (R, HW) @ (HW, 25) on the MXU.
    seq = jnp.dot(xm, kt_ref[...], preferred_element_type=f32)          # (R, 25) f32

    # 2) global pool = mean of the 25 local bins (matches the PyTorch module:
    #    adaptive_avg_pool2d(local_arv, 1)).
    g = jnp.mean(seq, axis=-1, keepdims=True)                           # (R, 1)

    # per-row "which channel am I" index, hoisted once for all conv taps
    cloc = lax.broadcasted_iota(jnp.int32, (R, 1), 0) % C

    # 3) the two Conv1d(1,1,k) passes + sigmoids + blend (all on tiny tensors)
    y_local = _conv1d_binmajor(seq, wl_ref, k, cloc, C)                 # (R, 25)
    y_global = _conv1d_channels(g, wg_ref, k, cloc, C)                  # (R, 1)
    att5 = (jax.nn.sigmoid(y_global) * (1.0 - local_weight)
            + jax.nn.sigmoid(y_local) * local_weight)                   # (R, 25)

    # 4) adaptive upsample (5,5)->(H,W): canonical (R,25) @ (25,HW) on the MXU,
    #    producing the attention map directly in the lane-dense layout.
    att_all = jnp.dot(att5.astype(jnp.bfloat16), ku_ref[...],
                      preferred_element_type=f32)                       # (R, HW) f32

    # 5) gate in f32 (v5e VPU has no bf16 ALU); cast once at the store.
    o_ref[...] = (x2.astype(f32) * att_all).astype(o_ref.dtype)


def _vmem_budget_bytes():
    """Generation-aware scoped-VMEM request: ~3/4 of physical VMEM, capped at
    100 MiB (v5e/v6e: 128 MiB physical -> ~96 MiB; v7x: 64 MiB -> ~48 MiB).
    Falls back to the v7x-safe number if the hardware query is unavailable."""
    phys = 64 << 20
    try:
        info = pltpu.get_tpu_info()
        for attr in ("vmem_capacity_bytes", "vmem_size_bytes", "vmem_bytes"):
            v = getattr(info, attr, None)
            if v:
                phys = int(v)
                break
    except Exception:
        pass
    return max(32 << 20, min((phys * 3) // 4, 100 << 20))


def _pick_batch_tile(B, C, HW, itemsize, target_block_bytes):
    """Largest divisor Bt of B whose (Bt*C, HW) x-block fits the byte target,
    preferring 8-row-aligned blocks (the (8,128) BlockSpec constraint, unless
    the block spans all rows) and, when possible, >= 2 grid steps so the
    'parallel' batch axis can shard across v7x's two TensorCores."""
    divs = [d for d in range(1, B + 1) if B % d == 0]
    cands = [d for d in divs if (d * C) % 8 == 0 or d == B]   # d == B always legal
    fit = [d for d in cands if d * C * HW * itemsize <= target_block_bytes]
    if not fit:
        # TODO(synk): spatial (HW) tiling for configs where even one batch
        # element exceeds the per-block byte target (mainly v7x, 64 MiB VMEM).
        return min(cands)
    multi = [d for d in fit if B // d >= 2]
    return max(multi) if multi else max(fit)


def mlca_pallas(x, w_global, w_local, *, local_size=5, local_weight=0.5):
    B, C, H, W = x.shape
    HW = H * W
    k = int(w_global.shape[-1])
    pad = (k - 1) // 2
    if pad >= C:
        raise ValueError(f"MLCA conv pad={pad} must be < channels={C}")
    Lp = int(local_size)
    if Lp < 2:
        raise ValueError("local_size must be >= 2")

    io_dtype = x.dtype if x.dtype in (jnp.float32, jnp.bfloat16) else jnp.float32
    isz = jnp.dtype(io_dtype).itemsize

    # Adaptive pool / upsample linear maps (PyTorch semantics), pre-transposed
    # host-side so both in-kernel matmuls are canonical (M,K)x(K,N).  Kept in
    # bf16: a single bf16 MXU pass (f32 accumulation) is plenty for a 25-wide
    # contraction and halves the constants' one-time DMA + VMEM footprint.
    P_h = _adaptive_pool_matrix(H, Lp)              # (Lp, H)
    P_w = _adaptive_pool_matrix(W, Lp)              # (Lp, W)
    U_h = _adaptive_pool_matrix(Lp, H)              # (H, Lp)
    U_w = _adaptive_pool_matrix(Lp, W)              # (W, Lp)
    KT = jnp.asarray(np.kron(P_h, P_w).T, dtype=jnp.bfloat16)     # (HW, Lp*Lp) pool
    Ku = jnp.asarray(np.kron(U_h, U_w).T, dtype=jnp.bfloat16)     # (Lp*Lp, HW) upsample

    # Lane-dense, host-flattened layout: 2-D blocks, no in-kernel reshape.
    x2 = x.reshape(B * C, HW).astype(io_dtype)
    wl = w_local.reshape(1, k).astype(jnp.float32)
    wg = w_global.reshape(1, k).astype(jnp.float32)

    # ---- generation-aware VMEM budget & byte-targeted batch tile ----------
    cap = _vmem_budget_bytes()

    def _padto(a, m):
        return -(-a // m) * m

    # Padded bf16 constants, worst case double-buffered (if Buffered(1) falls back).
    const_bytes = 2 * 2 * (_padto(HW, 16) * 128 + _padto(Lp * Lp, 16) * _padto(HW, 128))
    # Per-element VMEM: double-buffered in+out block (4*isz) plus ~3 live
    # f32-sized temporaries (att_all, f32 gate operand, pre-store product).
    per_elem = 4 * isz + 12
    avail = max(cap - const_bytes - (6 << 20), 4 << 20)
    target_blk = min(8 << 20, (avail // per_elem) * isz)

    Bt = _pick_batch_tile(B, C, HW, isz, target_blk)
    grid = (B // Bt,)
    rows = Bt * C

    kern = functools.partial(_mlca_kernel, k=k, local_weight=float(local_weight), C=C)

    cost = pl.CostEstimate(
        flops=int(4 * B * C * HW * (Lp * Lp) + 6 * B * C * HW),
        transcendentals=int(B * C * (Lp * Lp + 1)),
        bytes_accessed=int(2 * B * C * HW * isz + 2 * (KT.size + Ku.size) + 8 * k),
    )

    def _run(single_buffer_consts):
        const_kwargs = (
            dict(pipeline_mode=pl.Buffered(1)) if single_buffer_consts else {}
        )
        grid_spec = pltpu.PrefetchScalarGridSpec(
            num_scalar_prefetch=0,
            grid=grid,
            in_specs=[
                pl.BlockSpec((rows, HW), lambda b: (b, 0)),
                # grid-invariant constants: constant index_map => DMA'd once
                pl.BlockSpec((HW, Lp * Lp), lambda b: (0, 0), **const_kwargs),
                pl.BlockSpec((Lp * Lp, HW), lambda b: (0, 0), **const_kwargs),
                pl.BlockSpec(memory_space=pltpu.MemorySpace.SMEM),
                pl.BlockSpec(memory_space=pltpu.MemorySpace.SMEM),
            ],
            out_specs=pl.BlockSpec((rows, HW), lambda b: (b, 0)),
        )
        return pl.pallas_call(
            kern,
            out_shape=jax.ShapeDtypeStruct((B * C, HW), io_dtype),
            grid_spec=grid_spec,
            compiler_params=pltpu.CompilerParams(
                dimension_semantics=("parallel",),   # batch axis: megacore-shardable
                vmem_limit_bytes=int(cap),
            ),
            cost_estimate=cost,
        )(x2, KT, Ku, wl, wg)

    try:
        out2 = _run(True)     # single-buffered grid-invariant constants
    except Exception:
        # pipeline_mode=pl.Buffered(1) unsupported on this jax version:
        # fall back to default (double-buffered) constants, already budgeted.
        out2 = _run(False)
    return out2.reshape(B, C, H, W)


def mlca_reference(x, w_global, w_local, *, local_size=5, local_weight=0.5):
    """Pure-JAX reference, written to mirror the PyTorch forward (f32, HIGHEST)."""
    B, C, H, W = x.shape
    k = int(w_global.shape[-1])
    Lp = local_size
    pad = (k - 1) // 2
    hi = lax.Precision.HIGHEST

    P_h = jnp.asarray(_adaptive_pool_matrix(H, Lp))
    P_w = jnp.asarray(_adaptive_pool_matrix(W, Lp))
    U_h = jnp.asarray(_adaptive_pool_matrix(Lp, H))
    U_w = jnp.asarray(_adaptive_pool_matrix(Lp, W))
    wl = w_local.reshape(-1)
    wg = w_global.reshape(-1)

    def conv1d(seq, w):                       # seq: (B, L)
        L = seq.shape[-1]
        sp = jnp.pad(seq, ((0, 0), (pad, pad)))
        out = jnp.zeros_like(seq)
        for j in range(k):
            out = out + w[j] * sp[:, j:j + L]
        return out

    x32 = x.astype(jnp.float32)
    local = jnp.einsum('ph,bchw,qw->bcpq', P_h, x32, P_w, precision=hi)      # (B,C,Lp,Lp)
    g = jnp.mean(local.reshape(B, C, Lp * Lp), axis=-1)                      # (B,C)
    temp_local = jnp.swapaxes(local.reshape(B, C, Lp * Lp), -1, -2).reshape(B, Lp * Lp * C)

    y_local = conv1d(temp_local, wl)
    y_global = conv1d(g, wg)

    att_local = jax.nn.sigmoid(
        jnp.swapaxes(y_local.reshape(B, Lp * Lp, C), -1, -2)).reshape(B, C, Lp, Lp)
    att_global = jax.nn.sigmoid(y_global)[:, :, None, None]
    att5 = att_global * (1.0 - local_weight) + att_local * local_weight
    att_all = jnp.einsum('hp,bcpq,wq->bchw', U_h, att5, U_w, precision=hi)
    return x32 * att_all


if __name__ == "__main__":
    B, C, H, W = 2, 16, 16, 16
    local_size, gamma, b_par, local_weight = 5, 2, 1, 0.5

    # Conv1d kernel size, exactly as in MLCA.__init__ (in_size = C)
    t = int(abs(math.log(C, 2) + b_par) / gamma)
    k = t if t % 2 else t + 1

    key = jax.random.PRNGKey(0)
    kx, kwg, kwl = jax.random.split(key, 3)
    x = jax.random.normal(kx, (B, C, H, W), dtype=jnp.float32)
    bound = 1.0 / math.sqrt(k)  # PyTorch default conv init bound (fan_in = 1*k)
    w_global = jax.random.uniform(kwg, (1, 1, k), jnp.float32, -bound, bound)  # self.conv
    w_local = jax.random.uniform(kwl, (1, 1, k), jnp.float32, -bound, bound)   # self.conv_local

    out = mlca_pallas(x, w_global, w_local,
                      local_size=local_size, local_weight=local_weight)
    out = jax.block_until_ready(out)

    ref = mlca_reference(x, w_global, w_local,
                         local_size=local_size, local_weight=local_weight)
    ref = jax.block_until_ready(ref)

    # Single bf16 MXU passes (f32 accumulation) leave ~1e-3-level error vs the
    # HIGHEST-precision reference; elementwise (atol + rtol) plus a tight mean
    # bound.
    err = jnp.abs(out - ref)
    ok_elem = bool(jnp.all(err <= 5e-3 + 3e-2 * jnp.abs(ref)))
    mean_err = float(jnp.mean(err))
    if not (ok_elem and mean_err < 5e-3):
        raise AssertionError(
            f"Pallas MLCA mismatch vs JAX reference: max={float(jnp.max(err))} mean={mean_err}")

    # bf16 I/O path (halves HBM traffic for this HBM-bound kernel); loose check.
    out_bf16 = mlca_pallas(x.astype(jnp.bfloat16), w_global, w_local,
                           local_size=local_size, local_weight=local_weight)
    out_bf16 = jax.block_until_ready(out_bf16)
    bf_err = float(jnp.max(jnp.abs(out_bf16.astype(jnp.float32) - ref)))
    if not (bf_err < 0.15):
        raise AssertionError(f"Pallas MLCA bf16 path mismatch: max_abs_err={bf_err}")

    print("KERNEL_OK")
</pallas_src>

<mosaic_0001>
module attributes {stable_mosaic.version = 11 : i64} {
  func.func @_mlca_kernel(%arg0: i32, %arg1: memref<16x256xf32, #tpu.memory_space<vmem>>, %arg2: memref<256x25xbf16, #tpu.memory_space<vmem>>, %arg3: memref<25x256xbf16, #tpu.memory_space<vmem>>, %arg4: memref<1x3xf32, #tpu.memory_space<smem>>, %arg5: memref<1x3xf32, #tpu.memory_space<smem>>, %arg6: memref<16x256xf32, #tpu.memory_space<vmem>>) attributes {dimension_semantics = [#tpu.dimension_semantics<parallel>], iteration_bounds = array<i64: 2>, scalar_prefetch = 0 : i64, scratch_operands = 0 : i64, tpu.core_type = #tpu.core_type<tc>, window_params = [{transform_indices = @transform_0, window_bounds = array<i64: 16, 256>}, {pipeline_mode = #tpu.pipeline_mode<synchronous>, transform_indices = @transform_1, window_bounds = array<i64: 256, 25>}, {pipeline_mode = #tpu.pipeline_mode<synchronous>, transform_indices = @transform_2, window_bounds = array<i64: 25, 256>}, {transform_indices = @transform_3, window_bounds = array<i64: 1, 3>}, {transform_indices = @transform_4, window_bounds = array<i64: 1, 3>}, {transform_indices = @transform_5, window_bounds = array<i64: 16, 256>}]} {
    %c0 = arith.constant 0 : index
    %c0_0 = arith.constant 0 : index
    %0 = vector.load %arg1[%c0, %c0_0] : memref<16x256xf32, #tpu.memory_space<vmem>>, vector<16x256xf32>
    %1 = arith.truncf %0 : vector<16x256xf32> to vector<16x256xbf16>
    %c0_1 = arith.constant 0 : index
    %c0_2 = arith.constant 0 : index
    %2 = vector.load %arg2[%c0_1, %c0_2] : memref<256x25xbf16, #tpu.memory_space<vmem>>, vector<256x25xbf16>
    %cst = arith.constant dense<0.000000e+00> : vector<16x25xf32>
    %3 = tpu.matmul %1, %2, %cst {dimension_numbers = #tpu.dot_dimension_numbers<[1], [0], [0], [1], [0, 0, 1, 1], [], []>} : vector<16x256xbf16>, vector<256x25xbf16>, vector<16x25xf32> -> vector<16x25xf32>
    %cst_3 = arith.constant dense<0.000000e+00> : vector<16xf32>
    %4 = vector.multi_reduction <add>, %3, %cst_3 [1] : vector<16x25xf32> to vector<16xf32>
    %5 = vector.shape_cast %4 : vector<16xf32> to vector<16x1xf32>
    %cst_4 = arith.constant 2.500000e+01 : f32
    %6 = vector.broadcast %cst_4 : f32 to vector<16x1xf32>
    %7 = arith.divf %5, %6 : vector<16x1xf32>
    %8 = tpu.iota {dimensions = array<i32: 0>} : vector<16x1xi32>
    %c16_i32 = arith.constant 16 : i32
    %c0_i32 = arith.constant 0 : i32
    %9 = arith.cmpi eq, %c16_i32, %c0_i32 : i32
    %c1_i32 = arith.constant 1 : i32
    %10 = arith.select %9, %c1_i32, %c16_i32 : i32
    %11 = vector.broadcast %10 : i32 to vector<16x1xi32>
    %12 = arith.remsi %8, %11 : vector<16x1xi32>
    %c0_i32_5 = arith.constant 0 : i32
    %13 = vector.broadcast %c0_i32_5 : i32 to vector<16x1xi32>
    %14 = arith.cmpi ne, %12, %13 : vector<16x1xi32>
    %c0_i32_6 = arith.constant 0 : i32
    %15 = vector.broadcast %c0_i32_6 : i32 to vector<16x1xi32>
    %16 = arith.cmpi slt, %12, %15 : vector<16x1xi32>
    %c0_i32_7 = arith.constant 0 : i32
    %17 = arith.cmpi slt, %10, %c0_i32_7 : i32
    %18 = vector.broadcast %17 : i1 to vector<16x1xi1>
    %19 = vector.broadcast %18 : vector<16x1xi1> to vector<16x1xi1>
    %20 = arith.xori %16, %19 : vector<16x1xi1>
    %21 = arith.andi %20, %14 : vector<16x1xi1>
    %22 = vector.broadcast %10 : i32 to vector<16x1xi32>
    %23 = arith.addi %12, %22 : vector<16x1xi32>
    %24 = arith.select %21, %23, %12 : vector<16x1xi1>, vector<16x1xi32>
    %cst_8 = arith.constant 0.000000e+00 : f32
    %25 = vector.broadcast %cst_8 : f32 to vector<16x1xf32>
    %26 = vector.extract_strided_slice %3 {offsets = [0, 1], sizes = [16, 24], strides = [1, 1]} : vector<16x25xf32> to vector<16x24xf32>
    %27 = tpu.concatenate %26, %25 in 1 : vector<16x24xf32>, vector<16x1xf32> -> vector<16x25xf32>
    %28 = vector.extract_strided_slice %3 {offsets = [0, 0], sizes = [16, 24], strides = [1, 1]} : vector<16x25xf32> to vector<16x24xf32>
    %29 = tpu.concatenate %25, %28 in 1 : vector<16x1xf32>, vector<16x24xf32> -> vector<16x25xf32>
    %c0_9 = arith.constant 0 : index
    %c1 = arith.constant 1 : index
    %30 = memref.load %arg4[%c0_9, %c1] : memref<1x3xf32, #tpu.memory_space<smem>>
    %31 = vector.broadcast %30 : f32 to vector<16x25xf32>
    %32 = arith.mulf %31, %3 : vector<16x25xf32>
    %33 = vector.extract_strided_slice %3 {offsets = [15, 0], sizes = [1, 25], strides = [1, 1]} : vector<16x25xf32> to vector<1x25xf32>
    %34 = vector.extract_strided_slice %3 {offsets = [0, 0], sizes = [15, 25], strides = [1, 1]} : vector<16x25xf32> to vector<15x25xf32>
    %35 = tpu.concatenate %33, %34 in 0 : vector<1x25xf32>, vector<15x25xf32> -> vector<16x25xf32>
    %36 = vector.extract_strided_slice %29 {offsets = [15, 0], sizes = [1, 25], strides = [1, 1]} : vector<16x25xf32> to vector<1x25xf32>
    %37 = vector.extract_strided_slice %29 {offsets = [0, 0], sizes = [15, 25], strides = [1, 1]} : vector<16x25xf32> to vector<15x25xf32>
    %38 = tpu.concatenate %36, %37 in 0 : vector<1x25xf32>, vector<15x25xf32> -> vector<16x25xf32>
    %c0_10 = arith.constant 0 : index
    %c0_11 = arith.constant 0 : index
    %39 = memref.load %arg4[%c0_10, %c0_11] : memref<1x3xf32, #tpu.memory_space<smem>>
    %c1_i32_12 = arith.constant 1 : i32
    %40 = vector.broadcast %c1_i32_12 : i32 to vector<16x1xi32>
    %41 = arith.cmpi sge, %24, %40 : vector<16x1xi32>
    %42 = vector.shape_cast %41 : vector<16x1xi1> to vector<16x1xi1>
    %43 = vector.broadcast %42 : vector<16x1xi1> to vector<16x25xi1>
    %44 = arith.select %43, %35, %38 : vector<16x25xi1>, vector<16x25xf32>
    %45 = vector.broadcast %39 : f32 to vector<16x25xf32>
    %46 = arith.mulf %45, %44 : vector<16x25xf32>
    %47 = arith.addf %32, %46 : vector<16x25xf32>
    %48 = vector.extract_strided_slice %3 {offsets = [1, 0], sizes = [15, 25], strides = [1, 1]} : vector<16x25xf32> to vector<15x25xf32>
    %49 = vector.extract_strided_slice %3 {offsets = [0, 0], sizes = [1, 25], strides = [1, 1]} : vector<16x25xf32> to vector<1x25xf32>
    %50 = tpu.concatenate %48, %49 in 0 : vector<15x25xf32>, vector<1x25xf32> -> vector<16x25xf32>
    %51 = vector.extract_strided_slice %27 {offsets = [1, 0], sizes = [15, 25], strides = [1, 1]} : vector<16x25xf32> to vector<15x25xf32>
    %52 = vector.extract_strided_slice %27 {offsets = [0, 0], sizes = [1, 25], strides = [1, 1]} : vector<16x25xf32> to vector<1x25xf32>
    %53 = tpu.concatenate %51, %52 in 0 : vector<15x25xf32>, vector<1x25xf32> -> vector<16x25xf32>
    %c0_13 = arith.constant 0 : index
    %c2 = arith.constant 2 : index
    %54 = memref.load %arg4[%c0_13, %c2] : memref<1x3xf32, #tpu.memory_space<smem>>
    %c15_i32 = arith.constant 15 : i32
    %55 = vector.broadcast %c15_i32 : i32 to vector<16x1xi32>
    %56 = arith.cmpi slt, %24, %55 : vector<16x1xi32>
    %57 = vector.shape_cast %56 : vector<16x1xi1> to vector<16x1xi1>
    %58 = vector.broadcast %57 : vector<16x1xi1> to vector<16x25xi1>
    %59 = arith.select %58, %50, %53 : vector<16x25xi1>, vector<16x25xf32>
    %60 = vector.broadcast %54 : f32 to vector<16x25xf32>
    %61 = arith.mulf %60, %59 : vector<16x25xf32>
    %62 = arith.addf %47, %61 : vector<16x25xf32>
    %c0_14 = arith.constant 0 : index
    %c1_15 = arith.constant 1 : index
    %63 = memref.load %arg5[%c0_14, %c1_15] : memref<1x3xf32, #tpu.memory_space<smem>>
    %64 = vector.broadcast %63 : f32 to vector<16x1xf32>
    %65 = arith.mulf %64, %7 : vector<16x1xf32>
    %66 = vector.extract_strided_slice %7 {offsets = [15, 0], sizes = [1, 1], strides = [1, 1]} : vector<16x1xf32> to vector<1x1xf32>
    %67 = vector.extract_strided_slice %7 {offsets = [0, 0], sizes = [15, 1], strides = [1, 1]} : vector<16x1xf32> to vector<15x1xf32>
    %68 = tpu.concatenate %66, %67 in 0 : vector<1x1xf32>, vector<15x1xf32> -> vector<16x1xf32>
    %c-1_i32 = arith.constant -1 : i32
    %69 = vector.broadcast %c-1_i32 : i32 to vector<16x1xi32>
    %70 = arith.addi %24, %69 : vector<16x1xi32>
    %c0_i32_16 = arith.constant 0 : i32
    %71 = vector.broadcast %c0_i32_16 : i32 to vector<16x1xi32>
    %72 = arith.cmpi sge, %70, %71 : vector<16x1xi32>
    %c-1_i32_17 = arith.constant -1 : i32
    %73 = vector.broadcast %c-1_i32_17 : i32 to vector<16x1xi32>
    %74 = arith.addi %24, %73 : vector<16x1xi32>
    %c16_i32_18 = arith.constant 16 : i32
    %75 = vector.broadcast %c16_i32_18 : i32 to vector<16x1xi32>
    %76 = arith.cmpi slt, %74, %75 : vector<16x1xi32>
    %77 = arith.andi %72, %76 : vector<16x1xi1>
    %c0_19 = arith.constant 0 : index
    %c0_20 = arith.constant 0 : index
    %78 = memref.load %arg5[%c0_19, %c0_20] : memref<1x3xf32, #tpu.memory_space<smem>>
    %cst_21 = arith.constant 0.000000e+00 : f32
    %79 = vector.broadcast %cst_21 : f32 to vector<16x1xf32>
    %80 = arith.select %77, %68, %79 : vector<16x1xi1>, vector<16x1xf32>
    %81 = vector.broadcast %78 : f32 to vector<16x1xf32>
    %82 = arith.mulf %81, %80 : vector<16x1xf32>
    %83 = arith.addf %65, %82 : vector<16x1xf32>
    %84 = vector.extract_strided_slice %7 {offsets = [1, 0], sizes = [15, 1], strides = [1, 1]} : vector<16x1xf32> to vector<15x1xf32>
    %85 = vector.extract_strided_slice %7 {offsets = [0, 0], sizes = [1, 1], strides = [1, 1]} : vector<16x1xf32> to vector<1x1xf32>
    %86 = tpu.concatenate %84, %85 in 0 : vector<15x1xf32>, vector<1x1xf32> -> vector<16x1xf32>
    %c1_i32_22 = arith.constant 1 : i32
    %87 = vector.broadcast %c1_i32_22 : i32 to vector<16x1xi32>
    %88 = arith.addi %24, %87 : vector<16x1xi32>
    %c0_i32_23 = arith.constant 0 : i32
    %89 = vector.broadcast %c0_i32_23 : i32 to vector<16x1xi32>
    %90 = arith.cmpi sge, %88, %89 : vector<16x1xi32>
    %c1_i32_24 = arith.constant 1 : i32
    %91 = vector.broadcast %c1_i32_24 : i32 to vector<16x1xi32>
    %92 = arith.addi %24, %91 : vector<16x1xi32>
    %c16_i32_25 = arith.constant 16 : i32
    %93 = vector.broadcast %c16_i32_25 : i32 to vector<16x1xi32>
    %94 = arith.cmpi slt, %92, %93 : vector<16x1xi32>
    %95 = arith.andi %90, %94 : vector<16x1xi1>
    %c0_26 = arith.constant 0 : index
    %c2_27 = arith.constant 2 : index
    %96 = memref.load %arg5[%c0_26, %c2_27] : memref<1x3xf32, #tpu.memory_space<smem>>
    %cst_28 = arith.constant 0.000000e+00 : f32
    %97 = vector.broadcast %cst_28 : f32 to vector<16x1xf32>
    %98 = arith.select %95, %86, %97 : vector<16x1xi1>, vector<16x1xf32>
    %99 = vector.broadcast %96 : f32 to vector<16x1xf32>
    %100 = arith.mulf %99, %98 : vector<16x1xf32>
    %101 = arith.addf %83, %100 : vector<16x1xf32>
    %102 = arith.negf %101 : vector<16x1xf32>
    %103 = math.exp %102 : vector<16x1xf32>
    %cst_29 = arith.constant 1.000000e+00 : f32
    %104 = vector.broadcast %cst_29 : f32 to vector<16x1xf32>
    %105 = arith.addf %104, %103 : vector<16x1xf32>
    %106 = arith.divf %104, %105 : vector<16x1xf32>
    %cst_30 = arith.constant 5.000000e-01 : f32
    %107 = vector.broadcast %cst_30 : f32 to vector<16x1xf32>
    %108 = arith.mulf %106, %107 : vector<16x1xf32>
    %109 = arith.negf %62 : vector<16x25xf32>
    %110 = math.exp %109 : vector<16x25xf32>
    %cst_31 = arith.constant 1.000000e+00 : f32
    %111 = vector.broadcast %cst_31 : f32 to vector<16x25xf32>
    %112 = arith.addf %111, %110 : vector<16x25xf32>
    %113 = arith.divf %111, %112 : vector<16x25xf32>
    %cst_32 = arith.constant 5.000000e-01 : f32
    %114 = vector.broadcast %cst_32 : f32 to vector<16x25xf32>
    %115 = arith.mulf %113, %114 : vector<16x25xf32>
    %116 = vector.broadcast %108 : vector<16x1xf32> to vector<16x25xf32>
    %117 = arith.addf %116, %115 : vector<16x25xf32>
    %118 = arith.truncf %117 : vector<16x25xf32> to vector<16x25xbf16>
    %c0_33 = arith.constant 0 : index
    %c0_34 = arith.constant 0 : index
    %119 = vector.load %arg3[%c0_33, %c0_34] : memref<25x256xbf16, #tpu.memory_space<vmem>>, vector<25x256xbf16>
    %cst_35 = arith.constant dense<0.000000e+00> : vector<16x256xf32>
    %120 = tpu.matmul %118, %119, %cst_35 {dimension_numbers = #tpu.dot_dimension_numbers<[1], [0], [0], [1], [0, 0, 1, 1], [], []>} : vector<16x25xbf16>, vector<25x256xbf16>, vector<16x256xf32> -> vector<16x256xf32>
    %121 = arith.mulf %0, %120 : vector<16x256xf32>
    %c0_36 = arith.constant 0 : index
    %c0_37 = arith.constant 0 : index
    %122 = vector.load %arg6[%c0_36, %c0_37] : memref<16x256xf32, #tpu.memory_space<vmem>>, vector<16x256xf32>
    tpu.vector_store %arg6[%c0_36, %c0_37], %121 {strides = array<i32>} : memref<16x256xf32, #tpu.memory_space<vmem>>, vector<16x256xf32>,
    return
  }
  func.func @transform_0(%arg0: i32) -> (i32, i32) {
    %c0_i32 = arith.constant 0 : i32
    %c0_i32_0 = arith.constant 0 : i32
    return %arg0, %c0_i32 : i32, i32
  }
  func.func @transform_1(%arg0: i32) -> (i32, i32) {
    %c0_i32 = arith.constant 0 : i32
    %c0_i32_0 = arith.constant 0 : i32
    %c0_i32_1 = arith.constant 0 : i32
    return %c0_i32, %c0_i32_0 : i32, i32
  }
  func.func @transform_2(%arg0: i32) -> (i32, i32) {
    %c0_i32 = arith.constant 0 : i32
    %c0_i32_0 = arith.constant 0 : i32
    %c0_i32_1 = arith.constant 0 : i32
    return %c0_i32, %c0_i32_0 : i32, i32
  }
  func.func @transform_3(%arg0: i32) -> (i32, i32) {
    %c0_i32 = arith.constant 0 : i32
    %c0_i32_0 = arith.constant 0 : i32
    %c0_i32_1 = arith.constant 0 : i32
    return %c0_i32, %c0_i32_0 : i32, i32
  }
  func.func @transform_4(%arg0: i32) -> (i32, i32) {
    %c0_i32 = arith.constant 0 : i32
    %c0_i32_0 = arith.constant 0 : i32
    %c0_i32_1 = arith.constant 0 : i32
    return %c0_i32, %c0_i32_0 : i32, i32
  }
  func.func @transform_5(%arg0: i32) -> (i32, i32) {
    %c0_i32 = arith.constant 0 : i32
    %c0_i32_0 = arith.constant 0 : i32
    return %arg0, %c0_i32 : i32, i32
  }
}

module attributes {stable_mosaic.version = 11 : i64} {
  func.func @_mlca_kernel(%arg0: i32, %arg1: memref<16x256xf32, #tpu.memory_space<vmem>>, %arg2: memref<256x25xbf16, #tpu.memory_space<vmem>>, %arg3: memref<25x256xbf16, #tpu.memory_space<vmem>>, %arg4: memref<1x3xf32, #tpu.memory_space<smem>>, %arg5: memref<1x3xf32, #tpu.memory_space<smem>>, %arg6: memref<16x256xf32, #tpu.memory_space<vmem>>) attributes {dimension_semantics = [#tpu.dimension_semantics<parallel>], iteration_bounds = array<i64: 2>, scalar_prefetch = 0 : i64, scratch_operands = 0 : i64, tpu.core_type = #tpu.core_type<tc>, window_params = [{transform_indices = @transform_0, window_bounds = array<i64: 16, 256>}, {pipeline_mode = #tpu.pipeline_mode<synchronous>, transform_indices = @transform_1, window_bounds = array<i64: 256, 25>}, {pipeline_mode = #tpu.pipeline_mode<synchronous>, transform_indices = @transform_2, window_bounds = array<i64: 25, 256>}, {transform_indices = @transform_3, window_bounds = array<i64: 1, 3>}, {transform_indices = @transform_4, window_bounds = array<i64: 1, 3>}, {transform_indices = @transform_5, window_bounds = array<i64: 16, 256>}]} {
    %c0 = arith.constant 0 : index
    %c0_0 = arith.constant 0 : index
    %0 = vector.load %arg1[%c0, %c0_0] : memref<16x256xf32, #tpu.memory_space<vmem>>, vector<16x256xf32>
    %1 = arith.truncf %0 : vector<16x256xf32> to vector<16x256xbf16>
    %c0_1 = arith.constant 0 : index
    %c0_2 = arith.constant 0 : index
    %2 = vector.load %arg2[%c0_1, %c0_2] : memref<256x25xbf16, #tpu.memory_space<vmem>>, vector<256x25xbf16>
    %cst = arith.constant dense<0.000000e+00> : vector<16x25xf32>
    %3 = tpu.matmul %1, %2, %cst {dimension_numbers = #tpu.dot_dimension_numbers<[1], [0], [0], [1], [0, 0, 1, 1], [], []>} : vector<16x256xbf16>, vector<256x25xbf16>, vector<16x25xf32> -> vector<16x25xf32>
    %cst_3 = arith.constant dense<0.000000e+00> : vector<16xf32>
    %4 = vector.multi_reduction <add>, %3, %cst_3 [1] : vector<16x25xf32> to vector<16xf32>
    %5 = vector.shape_cast %4 : vector<16xf32> to vector<16x1xf32>
    %cst_4 = arith.constant 2.500000e+01 : f32
    %6 = vector.broadcast %cst_4 : f32 to vector<16x1xf32>
    %7 = arith.divf %5, %6 : vector<16x1xf32>
    %8 = tpu.iota {dimensions = array<i32: 0>} : vector<16x1xi32>
    %c16_i32 = arith.constant 16 : i32
    %c0_i32 = arith.constant 0 : i32
    %9 = arith.cmpi eq, %c16_i32, %c0_i32 : i32
    %c1_i32 = arith.constant 1 : i32
    %10 = arith.select %9, %c1_i32, %c16_i32 : i32
    %11 = vector.broadcast %10 : i32 to vector<16x1xi32>
    %12 = arith.remsi %8, %11 : vector<16x1xi32>
    %c0_i32_5 = arith.constant 0 : i32
    %13 = vector.broadcast %c0_i32_5 : i32 to vector<16x1xi32>
    %14 = arith.cmpi ne, %12, %13 : vector<16x1xi32>
    %c0_i32_6 = arith.constant 0 : i32
    %15 = vector.broadcast %c0_i32_6 : i32 to vector<16x1xi32>
    %16 = arith.cmpi slt, %12, %15 : vector<16x1xi32>
    %c0_i32_7 = arith.constant 0 : i32
    %17 = arith.cmpi slt, %10, %c0_i32_7 : i32
    %18 = vector.broadcast %17 : i1 to vector<16x1xi1>
    %19 = vector.broadcast %18 : vector<16x1xi1> to vector<16x1xi1>
    %20 = arith.xori %16, %19 : vector<16x1xi1>
    %21 = arith.andi %20, %14 : vector<16x1xi1>
    %22 = vector.broadcast %10 : i32 to vector<16x1xi32>
    %23 = arith.addi %12, %22 : vector<16x1xi32>
    %24 = arith.select %21, %23, %12 : vector<16x1xi1>, vector<16x1xi32>
    %cst_8 = arith.constant 0.000000e+00 : f32
    %25 = vector.broadcast %cst_8 : f32 to vector<16x1xf32>
    %26 = vector.extract_strided_slice %3 {offsets = [0, 1], sizes = [16, 24], strides = [1, 1]} : vector<16x25xf32> to vector<16x24xf32>
    %27 = tpu.concatenate %26, %25 in 1 : vector<16x24xf32>, vector<16x1xf32> -> vector<16x25xf32>
    %28 = vector.extract_strided_slice %3 {offsets = [0, 0], sizes = [16, 24], strides = [1, 1]} : vector<16x25xf32> to vector<16x24xf32>
    %29 = tpu.concatenate %25, %28 in 1 : vector<16x1xf32>, vector<16x24xf32> -> vector<16x25xf32>
    %c0_9 = arith.constant 0 : index
    %c1 = arith.constant 1 : index
    %30 = memref.load %arg4[%c0_9, %c1] : memref<1x3xf32, #tpu.memory_space<smem>>
    %31 = vector.broadcast %30 : f32 to vector<16x25xf32>
    %32 = arith.mulf %31, %3 : vector<16x25xf32>
    %33 = vector.extract_strided_slice %3 {offsets = [15, 0], sizes = [1, 25], strides = [1, 1]} : vector<16x25xf32> to vector<1x25xf32>
    %34 = vector.extract_strided_slice %3 {offsets = [0, 0], sizes = [15, 25], strides = [1, 1]} : vector<16x25xf32> to vector<15x25xf32>
    %35 = tpu.concatenate %33, %34 in 0 : vector<1x25xf32>, vector<15x25xf32> -> vector<16x25xf32>
    %36 = vector.extract_strided_slice %29 {offsets = [15, 0], sizes = [1, 25], strides = [1, 1]} : vector<16x25xf32> to vector<1x25xf32>
    %37 = vector.extract_strided_slice %29 {offsets = [0, 0], sizes = [15, 25], strides = [1, 1]} : vector<16x25xf32> to vector<15x25xf32>
    %38 = tpu.concatenate %36, %37 in 0 : vector<1x25xf32>, vector<15x25xf32> -> vector<16x25xf32>
    %c0_10 = arith.constant 0 : index
    %c0_11 = arith.constant 0 : index
    %39 = memref.load %arg4[%c0_10, %c0_11] : memref<1x3xf32, #tpu.memory_space<smem>>
    %c1_i32_12 = arith.constant 1 : i32
    %40 = vector.broadcast %c1_i32_12 : i32 to vector<16x1xi32>
    %41 = arith.cmpi sge, %24, %40 : vector<16x1xi32>
    %42 = vector.shape_cast %41 : vector<16x1xi1> to vector<16x1xi1>
    %43 = vector.broadcast %42 : vector<16x1xi1> to vector<16x25xi1>
    %44 = arith.select %43, %35, %38 : vector<16x25xi1>, vector<16x25xf32>
    %45 = vector.broadcast %39 : f32 to vector<16x25xf32>
    %46 = arith.mulf %45, %44 : vector<16x25xf32>
    %47 = arith.addf %32, %46 : vector<16x25xf32>
    %48 = vector.extract_strided_slice %3 {offsets = [1, 0], sizes = [15, 25], strides = [1, 1]} : vector<16x25xf32> to vector<15x25xf32>
    %49 = vector.extract_strided_slice %3 {offsets = [0, 0], sizes = [1, 25], strides = [1, 1]} : vector<16x25xf32> to vector<1x25xf32>
    %50 = tpu.concatenate %48, %49 in 0 : vector<15x25xf32>, vector<1x25xf32> -> vector<16x25xf32>
    %51 = vector.extract_strided_slice %27 {offsets = [1, 0], sizes = [15, 25], strides = [1, 1]} : vector<16x25xf32> to vector<15x25xf32>
    %52 = vector.extract_strided_slice %27 {offsets = [0, 0], sizes = [1, 25], strides = [1, 1]} : vector<16x25xf32> to vector<1x25xf32>
    %53 = tpu.concatenate %51, %52 in 0 : vector<15x25xf32>, vector<1x25xf32> -> vector<16x25xf32>
    %c0_13 = arith.constant 0 : index
    %c2 = arith.constant 2 : index
    %54 = memref.load %arg4[%c0_13, %c2] : memref<1x3xf32, #tpu.memory_space<smem>>
    %c15_i32 = arith.constant 15 : i32
    %55 = vector.broadcast %c15_i32 : i32 to vector<16x1xi32>
    %56 = arith.cmpi slt, %24, %55 : vector<16x1xi32>
    %57 = vector.shape_cast %56 : vector<16x1xi1> to vector<16x1xi1>
    %58 = vector.broadcast %57 : vector<16x1xi1> to vector<16x25xi1>
    %59 = arith.select %58, %50, %53 : vector<16x25xi1>, vector<16x25xf32>
    %60 = vector.broadcast %54 : f32 to vector<16x25xf32>
    %61 = arith.mulf %60, %59 : vector<16x25xf32>
    %62 = arith.addf %47, %61 : vector<16x25xf32>
    %c0_14 = arith.constant 0 : index
    %c1_15 = arith.constant 1 : index
    %63 = memref.load %arg5[%c0_14, %c1_15] : memref<1x3xf32, #tpu.memory_space<smem>>
    %64 = vector.broadcast %63 : f32 to vector<16x1xf32>
    %65 = arith.mulf %64, %7 : vector<16x1xf32>
    %66 = vector.extract_strided_slice %7 {offsets = [15, 0], sizes = [1, 1], strides = [1, 1]} : vector<16x1xf32> to vector<1x1xf32>
    %67 = vector.extract_strided_slice %7 {offsets = [0, 0], sizes = [15, 1], strides = [1, 1]} : vector<16x1xf32> to vector<15x1xf32>
    %68 = tpu.concatenate %66, %67 in 0 : vector<1x1xf32>, vector<15x1xf32> -> vector<16x1xf32>
    %c-1_i32 = arith.constant -1 : i32
    %69 = vector.broadcast %c-1_i32 : i32 to vector<16x1xi32>
    %70 = arith.addi %24, %69 : vector<16x1xi32>
    %c0_i32_16 = arith.constant 0 : i32
    %71 = vector.broadcast %c0_i32_16 : i32 to vector<16x1xi32>
    %72 = arith.cmpi sge, %70, %71 : vector<16x1xi32>
    %c-1_i32_17 = arith.constant -1 : i32
    %73 = vector.broadcast %c-1_i32_17 : i32 to vector<16x1xi32>
    %74 = arith.addi %24, %73 : vector<16x1xi32>
    %c16_i32_18 = arith.constant 16 : i32
    %75 = vector.broadcast %c16_i32_18 : i32 to vector<16x1xi32>
    %76 = arith.cmpi slt, %74, %75 : vector<16x1xi32>
    %77 = arith.andi %72, %76 : vector<16x1xi1>
    %c0_19 = arith.constant 0 : index
    %c0_20 = arith.constant 0 : index
    %78 = memref.load %arg5[%c0_19, %c0_20] : memref<1x3xf32, #tpu.memory_space<smem>>
    %cst_21 = arith.constant 0.000000e+00 : f32
    %79 = vector.broadcast %cst_21 : f32 to vector<16x1xf32>
    %80 = arith.select %77, %68, %79 : vector<16x1xi1>, vector<16x1xf32>
    %81 = vector.broadcast %78 : f32 to vector<16x1xf32>
    %82 = arith.mulf %81, %80 : vector<16x1xf32>
    %83 = arith.addf %65, %82 : vector<16x1xf32>
    %84 = vector.extract_strided_slice %7 {offsets = [1, 0], sizes = [15, 1], strides = [1, 1]} : vector<16x1xf32> to vector<15x1xf32>
    %85 = vector.extract_strided_slice %7 {offsets = [0, 0], sizes = [1, 1], strides = [1, 1]} : vector<16x1xf32> to vector<1x1xf32>
    %86 = tpu.concatenate %84, %85 in 0 : vector<15x1xf32>, vector<1x1xf32> -> vector<16x1xf32>
    %c1_i32_22 = arith.constant 1 : i32
    %87 = vector.broadcast %c1_i32_22 : i32 to vector<16x1xi32>
    %88 = arith.addi %24, %87 : vector<16x1xi32>
    %c0_i32_23 = arith.constant 0 : i32
    %89 = vector.broadcast %c0_i32_23 : i32 to vector<16x1xi32>
    %90 = arith.cmpi sge, %88, %89 : vector<16x1xi32>
    %c1_i32_24 = arith.constant 1 : i32
    %91 = vector.broadcast %c1_i32_24 : i32 to vector<16x1xi32>
    %92 = arith.addi %24, %91 : vector<16x1xi32>
    %c16_i32_25 = arith.constant 16 : i32
    %93 = vector.broadcast %c16_i32_25 : i32 to vector<16x1xi32>
    %94 = arith.cmpi slt, %92, %93 : vector<16x1xi32>
    %95 = arith.andi %90, %94 : vector<16x1xi1>
    %c0_26 = arith.constant 0 : index
    %c2_27 = arith.constant 2 : index
    %96 = memref.load %arg5[%c0_26, %c2_27] : memref<1x3xf32, #tpu.memory_space<smem>>
    %cst_28 = arith.constant 0.000000e+00 : f32
    %97 = vector.broadcast %cst_28 : f32 to vector<16x1xf32>
    %98 = arith.select %95, %86, %97 : vector<16x1xi1>, vector<16x1xf32>
    %99 = vector.broadcast %96 : f32 to vector<16x1xf32>
    %100 = arith.mulf %99, %98 : vector<16x1xf32>
    %101 = arith.addf %83, %100 : vector<16x1xf32>
    %102 = arith.negf %101 : vector<16x1xf32>
    %103 = math.exp %102 : vector<16x1xf32>
    %cst_29 = arith.constant 1.000000e+00 : f32
    %104 = vector.broadcast %cst_29 : f32 to vector<16x1xf32>
    %105 = arith.addf %104, %103 : vector<16x1xf32>
    %106 = arith.divf %104, %105 : vector<16x1xf32>
    %cst_30 = arith.constant 5.000000e-01 : f32
    %107 = vector.broadcast %cst_30 : f32 to vector<16x1xf32>
    %108 = arith.mulf %106, %107 : vector<16x1xf32>
    %109 = arith.negf %62 : vector<16x25xf32>
    %110 = math.exp %109 : vector<16x25xf32>
    %cst_31 = arith.constant 1.000000e+00 : f32
    %111 = vector.broadcast %cst_31 : f32 to vector<16x25xf32>
    %112 = arith.addf %111, %110 : vector<16x25xf32>
    %113 = arith.divf %111, %112 : vector<16x25xf32>
    %cst_32 = arith.constant 5.000000e-01 : f32
    %114 = vector.broadcast %cst_32 : f32 to vector<16x25xf32>
    %115 = arith.mulf %113, %114 : vector<16x25xf32>
    %116 = vector.broadcast %108 : vector<16x1xf32> to vector<16x25xf32>
    %117 = arith.addf %116, %115 : vector<16x25xf32>
    %118 = arith.truncf %117 : vector<16x25xf32> to vector<16x25xbf16>
    %c0_33 = arith.constant 0 : index
    %c0_34 = arith.constant 0 : index
    %119 = vector.load %arg3[%c0_33, %c0_34] : memref<25x256xbf16, #tpu.memory_space<vmem>>, vector<25x256xbf16>
    %cst_35 = arith.constant dense<0.000000e+00> : vector<16x256xf32>
    %120 = tpu.matmul %118, %119, %cst_35 {dimension_numbers = #tpu.dot_dimension_numbers<[1], [0], [0], [1], [0, 0, 1, 1], [], []>} : vector<16x25xbf16>, vector<25x256xbf16>, vector<16x256xf32> -> vector<16x256xf32>
    %121 = arith.mulf %0, %120 : vector<16x256xf32>
    %c0_36 = arith.constant 0 : index
    %c0_37 = arith.constant 0 : index
    %122 = vector.load %arg6[%c0_36, %c0_37] : memref<16x256xf32, #tpu.memory_space<vmem>>, vector<16x256xf32>
    tpu.vector_store %arg6[%c0_36, %c0_37], %121 {strides = array<i32>} : memref<16x256xf32, #tpu.memory_space<vmem>>, vector<16x256xf32>,
    return
  }
  func.func @transform_0(%arg0: i32) -> (i32, i32) {
    %c0_i32 = arith.constant 0 : i32
    %c0_i32_0 = arith.constant 0 : i32
    return %arg0, %c0_i32 : i32, i32
  }
  func.func @transform_1(%arg0: i32) -> (i32, i32) {
    %c0_i32 = arith.constant 0 : i32
    %c0_i32_0 = arith.constant 0 : i32
    %c0_i32_1 = arith.constant 0 : i32
    return %c0_i32, %c0_i32_0 : i32, i32
  }
  func.func @transform_2(%arg0: i32) -> (i32, i32) {
    %c0_i32 = arith.constant 0 : i32
    %c0_i32_0 = arith.constant 0 : i32
    %c0_i32_1 = arith.constant 0 : i32
    return %c0_i32, %c0_i32_0 : i32, i32
  }
  func.func @transform_3(%arg0: i32) -> (i32, i32) {
    %c0_i32 = arith.constant 0 : i32
    %c0_i32_0 = arith.constant 0 : i32
    %c0_i32_1 = arith.constant 0 : i32
    return %c0_i32, %c0_i32_0 : i32, i32
  }
  func.func @transform_4(%arg0: i32) -> (i32, i32) {
    %c0_i32 = arith.constant 0 : i32
    %c0_i32_0 = arith.constant 0 : i32
    %c0_i32_1 = arith.constant 0 : i32
    return %c0_i32, %c0_i32_0 : i32, i32
  }
  func.func @transform_5(%arg0: i32) -> (i32, i32) {
    %c0_i32 = arith.constant 0 : i32
    %c0_i32_0 = arith.constant 0 : i32
    return %arg0, %c0_i32 : i32, i32
  }
}

</mosaic_0001>

<bundles_post_ra>
// kernel: tpu_custom_call.1
= control target key start
LH: loop header
LB: loop body
LE: loop exit
PB: predicated region body
PF: predicated region fallthrough
CT: control target
= control target key end

     0   :  { %10 = vsyncpa [#allocation4], 0  ;;  %s1405_s0 = inlined_call_operand.vmem [shape: f32[32,256], index: 0, kind: input, shape index: {}]   ;;  %s1406_s1 = inlined_call_operand.vmem [shape: bf16[256,25], index: 1, kind: input, shape index: {}]   ;;  %s1407_s2 = inlined_call_operand.vmem [shape: bf16[25,256], index: 2, kind: input, shape index: {}]   ;;  %s1408_s3 = inlined_call_operand.vmem [shape: f32[1,3], index: 3, kind: input, shape index: {}]   ;;  %s1409_s4 = inlined_call_operand.vmem [shape: f32[1,3], index: 4, kind: input, shape index: {}]   ;;  %s1410_s5 = inlined_call_operand.hbm [shape: f32[32,256], index: 5, kind: output, shape index: {}]  }
   0x1   :  { %11 = vsyncpa [#allocation6], 0 }
   0x2   :  { %12 = vsyncpa [#allocation3], 0 }
   0x3   :  { %14 = vsyncpa [#allocation3 + $0x1], 0  ;;  %s1152_s18 = smov 0   ;;  %s1154_s19 = smov 0  }
   0x4   :  { %s1156_s20 = smov 0   ;;  %s1158_s21 = smov 0  }
   0x5 LB: > { %s1173_s22 = sadd.s32 4294967295, %s1111_s21   ;;  %s833_s23 = sadd.s32 4294967294, %s1111_s21   ;;  %s1111_s21 = sphi %s1158_s21, %s1428_s21   ;;  %s1107_s20 = sphi %s1156_s20, %s1427_s20   ;;  %s1103_s19 = sphi %s1154_s19, %s1426_s19   ;;  %s1099_s18 = sphi %s1152_s18, %s1425_s18  }
   0x6   : > { %s1177_s24 = sadd.s32 1, %s1111_s21   ;;  %s137_s25 = sadd.s32 1, %s1107_s20 }
   0x7   : > { %s134_s26 = ssub.s32 %s1111_s21, %s1177_s24  ;;  %p147_p0 = scmp.ne.s32.totalorder %s1107_s20, %s1103_s19 }
   0x8   : > { %p135_p1 = scmp.eq.s32.totalorder %s134_s26, 0  ;;  %p148_p2 = scmp.eq.s32.totalorder %s1173_s22, 1 }
   0x9   : > { %p153_p3 = scmp.ne.s32.totalorder %s1103_s19, %s1099_s18  ;;  %p154_p4 = scmp.eq.s32.totalorder %s833_s23, 1 }
   0xa   : > { %s1188_s27 = scalar_select %p135_p1, %s1107_s20, %s137_s25  }
   0xb   : > { %p1190_p5 = por %p148_p2, %p147_p0  ;;  %p1194_p6 = por %p154_p4, %p153_p3 }
   0xc   : > { %p834_p7 = scmp.ge.s32.totalorder %s1111_s21, 1  ;;  %p161_p8 = scmp.lt.s32.totalorder %s1111_s21, 3 }
   0xd   : > { %s1414_s28 = scalar_select %p1190_p5, 1, 0 }
   0xe   : > { %s1415_s29 = scalar_select %p1194_p6, 1, 0 }
   0xf   : > { %p1411_p9 = scmp.eq.s32.totalorder %s1173_s22, 0  ;;  %p1201_p10 = pnand %p834_p7, %p161_p8 }
  0x10   : > { %s180_s8 = sshll.u32 %s1408_s3, 4  ;;  %s191_s11 = sshll.u32 %s1409_s4, 4  ;;  %s181_s8 = int_to_ptr.vmem [resolvable:$true] %s180_s8  ;;  %s192_s11 = int_to_ptr.vmem [resolvable:$true] %s191_s11 }
  0x11   : > { %s1416_s30 = scalar_select %p1201_p10, 1, 0 }
  0x12   : > { %p915_p11 = pneg %p1201_p10  ;;  %s1011_s13 = scalar_lea.vmem %s181_s8, 16 }
  0x13   : > { %p1012_p13 = scmp.ne.s32.totalorder %s181_s8, %s1011_s13  ;;  %p1019_p3 = scmp.lt.s32.totalorder %s181_s8, %s181_s8 }
  0x14   : > { %p1215_p12 = pnand %p1411_p9, %p915_p11  ;;  %p1020_p4 = scmp.lt.s32.totalorder %s1011_s13, %s1011_s13 }
  0x16   : > { %p1013_p0 = pneg %p1215_p12  ;;  %p1021_p7 = por %p1020_p4, %p1019_p3 }
  0x18   : > { %p1014_p1 = pnand %p1013_p0, %p1012_p13 }
  0x1a   : > { %p1015_p2 = pneg %p1014_p1 }
  0x1c   : > { %p1022_p8 = pnand %p1021_p7, %p1015_p2 }
  0x1e   : > { %1025 = shalt.err (!%p1022_p8)
}
  0x1f   : > { %s1113_s14 = smov [#allocation2]   ;;  %s1026_s15 = scalar_lea.vmem %s192_s11, 16 }
  0x20   : > { %918 = dma.vmem_to_smem (!%p1215_p12), %s181_s8, 16, %s1113_s14, [#allocation4]  }
  0x21   : > { %p1027_p11 = scmp.ne.s32.totalorder %s192_s11, %s1026_s15  ;;  %p1034_p5 = scmp.lt.s32.totalorder %s192_s11, %s192_s11 }
  0x22   : > { %p1035_p10 = scmp.lt.s32.totalorder %s1026_s15, %s1026_s15 }
  0x23   : > { %p1029_p9 = pnand %p1027_p11, %p1013_p0 }
  0x24   : > { %p1036_p13 = por %p1035_p10, %p1034_p5 }
  0x25   : > { %p1030_p6 = pneg %p1029_p9 }
  0x27   : > { %p1037_p1 = pnand %p1036_p13, %p1030_p6 }
  0x29   : > { %1040 = shalt.err (!%p1037_p1)
}
  0x2a   : > { %s1114_s16 = smov [#allocation5]   ;;  %p1418_p2 = scmp.ne.s32.totalorder %s1416_s30, 0 }
  0x2b   : > { %921 = dma.vmem_to_smem (!%p1215_p12), %s192_s11, 16, %s1114_s16, [#allocation6]  }
  0x2c   : > { %214 = sbr.rel (%p1418_p2) target bundleno = 861 (0x35d), region = 40  ;;  %p1419_p3 = scmp.eq.s32.totalorder (!%p1418_p2), %s1173_s22, 0 }
  0x33   : > { %1086 = dma.done.wait (%p1419_p3), [#allocation4], 16   ;;  %p1420_p4 = pmov %p1419_p3 }
  0x34   : > { %p1421_p9 = pmov %p1419_p3 }
  0x35   : > { %1088 = vsyncadd (%p1420_p4), [#allocation4], 4294967280 }
  0x36   : > { %1090 = dma.done.wait (%p1421_p9), [#allocation6], 16   ;;  %p1422_p5 = pmov %p1419_p3 }
  0x38   : > { %1092 = vsyncadd (%p1422_p5), [#allocation6], 4294967280 }
  0x39   : > { %224 = sfence }
  0x3a   : > { %v973_v0 = vld [vmem:[%s1406_s1 + $0x40] sm:$0xff]   ;;  %s842_s25 = sshll.u32 %s1173_s22, 1  ;;  %v975_v2 = vld [vmem:[%s1406_s1 + $0x48] sm:$0xff]   ;;  %v977_v4 = vld [vmem:[%s1406_s1 + $0x50] sm:$0xff]   ;;  %s1299_s7 = sld [smem:[#allocation2]]  ;;  %vm432_vm0 = vcmask 203776   ;;  %v442_v44 = vlaneseq }
  0x3b   : > { %v974_v1 = vld [vmem:[%s1406_s1] sm:$0xff]   ;;  %883 = vmatprep.subr.bf16.mxu0 %v973_v0  ;;  %p249_p6 = scmp.lt.s32.totalorder %s842_s25, 3  ;;  %v976_v3 = vld [vmem:[%s1406_s1 + $0x8] sm:$0xff]   ;;  %v978_v5 = vld [vmem:[%s1406_s1 + $0x10] sm:$0xff]   ;;  %s1301_s9 = sld [smem:[#allocation2 + $0x1]]  ;;  %vm495_vm1 = vcmask 1040384  }
  0x3c   : > { %884 = vmatpush3.bf16.msra.mxu0 %v974_v1  ;;  %v979_v6 = vld [vmem:[%s1406_s1 + $0x58] sm:$0xff]   ;;  %v981_v8 = vld [vmem:[%s1406_s1 + $0x60] sm:$0xff]   ;;  %v983_v10 = vld [vmem:[%s1406_s1 + $0x68] sm:$0xff]   ;;  %vm524_vm2 = vcmask 1046528   ;;  %s1116_s10 = smov 127   ;;  %v1117_v43 = vmov 0  }
  0x3d   : > { %885 = vmatprep.subr.bf16.mxu0 %v975_v2  ;;  %s1430_s25 = smov (!%p249_p6, %s842_s25), 3  ;;  %v980_v7 = vld [vmem:[%s1406_s1 + $0x18] sm:$0xff]   ;;  %v982_v9 = vld [vmem:[%s1406_s1 + $0x20] sm:$0xff]   ;;  %v984_v14 = vld [vmem:[%s1406_s1 + $0x28] sm:$0xff]   ;;  %971 = vset.pattern.permute.xlu1 %v1117_v43  ;;  %v443_v45 = vshrl.u32 %v442_v44, 7  ;;  %vm486_vm3 = vcmask 7168  }
  0x3e   : > { %s880_s16 = sshll.u32 %s1430_s25, 4  ;;  %v985_v15 = vld [vmem:[%s1406_s1 + $0x70] sm:$0xff]   ;;  %v987_v17 = vld [vmem:[%s1406_s1 + $0x78] sm:$0xff]   ;;  %715 = vmatprep.mubr.bf16.mxu1 %v1117_v43  ;;  %972 = vset.pattern.permute.xlu0 %v1117_v43  ;;  %s1315_s25 = sld [smem:[#allocation2 + $0x2]]  ;;  %vm477_vm5 = vcmask 195584   ;;  %vm673_vm9 = vcmask 1043456  }
  0x3f   : > { %s253_s8 = scalar_lea.vmem %s1405_s0, %s880_s16  ;;  %v986_v16 = vld [vmem:[%s1406_s1 + $0x30] sm:$0xff]   ;;  %v988_v18 = vld [vmem:[%s1406_s1 + $0x38] sm:$0xff]   ;;  %v449_v47 = vand.u32 15, %v443_v45  ;;  %v444_v61 = vadd.s32 8, %v443_v45  ;;  %s1321_s11 = sld [smem:[#allocation5]]  ;;  %vm674_vm10 = vcmask 1044480  }
  0x40   : > { %886 = vmatpush3.bf16.msra.mxu0 %v976_v3  ;;  %v1272_v11 = vld [vmem:[%s253_s8 + $0x8] sm:$0xff]  ;;  %v1274_v12 = vld [vmem:[%s253_s8 + $0x18] sm:$0xff]  ;;  %v1293_v19 = vld [vmem:[%s253_s8] sm:$0xff]  ;;  %v519_v29 = vstv %s1299_s7  ;;  %s863_s12 = sld [smem:[#allocation5 + $0x1]]  ;;  %s1323_s13 = sld [smem:[#allocation5 + $0x2]] }
  0x41   : > { %887 = vmatprep.subr.bf16.mxu0 %v977_v4  ;;  %v262_v13 = vpack.c.bf16 %v1274_v12, %v1272_v11  ;;  %v1295_v20 = vld [vmem:[%s253_s8 + $0x10] sm:$0xff]  ;;  %s1115_s8 = smov 1   ;;  %v490_v34 = vstv %s1301_s9  ;;  %vm511_vm4 = vcmp.ge.s32.totalorder %v449_v47, 1  ;;  %v456_v62 = vand.u32 15, %v444_v61  ;;  %s245_s7 = sand.u32 1, %s1103_s19  }
  0x42   : > { %v261_v21 = vpack.c.bf16 %v1295_v20, %v1293_v19  ;;  %v568_v0 = vadd.s32 4294967295, %v449_v47  ;;  %s841_s9 = sshll.u32 %s245_s7, 5  ;;  %p1423_p12 = scmp.ne.s32.totalorder %s1414_s28, 0 }
  0x43   : > { %423 = vmatprep.mubr.bf16.mxu0 %v262_v13  ;;  %v592_v1 = vadd.s32 1, %v456_v62  ;;  %vm543_vm8 = vcmp.lt.s32.totalorder %v456_v62, 15  ;;  %s1119_s15 = smov [#allocation7]  }
  0x44   : > { %888 = vmatpush3.bf16.msra.mxu0 %v978_v5  ;;  %v550_v55 = vstv %s1315_s25  ;;  %vm570_vm6 = vcmp.ge.s32.totalorder %v568_v0, 0  ;;  %s882_s25 = sshll.u32 %s1173_s22, 9  ;;  %s1364_s22 = scalar_lea.sflag [#allocation3], %s245_s7 }
  0x45   : > { %889 = vmatprep.subr.bf16.mxu0 %v979_v6  ;;  %v579_v6 = vstv %s1321_s11  ;;  %vm596_vm7 = vcmp.lt.s32.totalorder %v592_v1, 16  ;;  %s1045_s16 = sshll.u32 %s1119_s15, 4  ;;  %s1046_s16 = int_to_ptr.vmem [resolvable:$false] %s1045_s16 }
  0x46   : > { %s1047_s17 = scalar_lea.vmem %s1046_s16, 1024 }
  0x48   : > { %890 = vmatpush3.bf16.msra.mxu0 %v980_v7 }
  0x49   : > { %891 = vmatprep.subr.bf16.mxu0 %v981_v8 }
  0x4c   : > { %892 = vmatpush3.bf16.msra.mxu0 %v982_v9 }
  0x4d   : > { %893 = vmatprep.subr.bf16.mxu0 %v983_v10 }
  0x50   : > { %894 = vmatpush3.bf16.msra.mxu0 %v984_v14  ;;  %v556_v14 = vstv %s863_s12 }
  0x51   : > { %895 = vmatprep.subr.bf16.mxu0 %v985_v15  ;;  %v602_v15 = vstv %s1323_s13  ;;  %s1362_s13 = scalar_lea.hbm %s1410_s5, %s882_s25 }
  0x54   : > { %896 = vmatpush3.bf16.msra.mxu0 %v986_v16 }
  0x55   : > { %897 = vmatprep.subr.bf16.mxu0 %v987_v17 }
  0x58   : > { %898 = vmatpush3.bf16.msra.mxu0 %v988_v18 }
  0x5b   : > { %424 = vmatmul.mubr.bf16.vlgmr.msra.gmra.mrb[0].mxu0 %v261_v21 }
 0x12e   : > { %v899_v22 = vpop.f32.mrb[0].mxu0 }
 0x12f   : > { %v900_v23 = vpop.f32.mrb[1].mxu0 }
 0x130   : > { %v901_v24 = vadd.f32 %v900_v23, %v899_v22  ;;  %v902_v25 = vpop.f32.mrb[2].mxu0 }
 0x131   : > { %v903_v26 = vpop.f32.mrb[3].mxu0 }
 0x132   : > { %v904_v27 = vadd.f32 %v903_v26, %v902_v25  ;;  %480 = vrot.lane.b32.xlu1 %v901_v24, %s1115_s8  ;;  %v433_v28 = vsel %vm432_vm0, %v901_v24, 0.0  ;;  %v496_v31 = vrot.slane %v901_v24, 7  ;;  %v525_v32 = vrot.slane %v901_v24, 1 }
 0x133   : > { %434 = vadd.xlane.f32.xlu0 %v433_v28  ;;  %v491_v56 = vmul.f32 %v901_v24, %v490_v34 }
 0x134   : > { %v493_v30 = vrot.slane %v904_v27, 7  ;;  %v526_v33 = vrot.slane %v904_v27, 1  ;;  %v436_v35 = vsel %vm432_vm0, %v904_v27, 0.0  ;;  %v492_v41 = vmul.f32 %v904_v27, %v490_v34 }
 0x136   : > { %482 = vrot.lane.b32.xlu1 %v904_v27, %s1115_s8  ;;  %v497_v36 = vsel %vm495_vm1, %v496_v31, %v493_v30  ;;  %v500_v37 = vsel %vm495_vm1, %v493_v30, %v496_v31  ;;  %v527_v38 = vsel %vm524_vm2, %v525_v32, %v526_v33  ;;  %v1311_v40 = vsel %vm524_vm2, %v526_v33, %v525_v32  ;;  %s247_s8 = scalar_lea.vmem [#allocation7], %s841_s9 }
 0x137   : > { %437 = vadd.xlane.f32.xlu0 %v436_v35  ;;  %v521_v39 = vmul.f32 %v519_v29, %v497_v36  ;;  %v551_v59 = vmul.f32 %v550_v55, %v527_v38 }
 0x139   : > { %v1313_v42 = vadd.f32 %v521_v39, %v492_v41 }
 0x13a   : > { %473 = vrot.lane.b32.xlu1 %v904_v27, %s1116_s10 }
 0x14d   : > { %471 = vrot.lane.b32.xlu0 %v901_v24, %s1116_s10  ;;  %s749_s10 = sshll.u32 %s247_s8, 4  ;;  %s1355_s10 = int_to_ptr.vmem [resolvable:$true] %s749_s10 }
 0x14e   : > { %s1041_s14 = scalar_lea.vmem %s1355_s10, 512  ;;  %p1048_p8 = scmp.lt.s32.totalorder %s1355_s10, %s1046_s16 }
 0x14f   : > { %p1042_p10 = scmp.ne.s32.totalorder %s1355_s10, %s1041_s14  ;;  %p1049_p11 = scmp.lt.s32.totalorder %s1047_s17, %s1041_s14 }
 0x151   : > { %p1043_p0 = pnand %p1042_p10, %p1423_p12  ;;  %p1050_p13 = por %p1049_p11, %p1048_p8 }
 0x153   : > { %p1044_p7 = pneg %p1043_p0 }
 0x155   : > { %p1051_p1 = pnand %p1050_p13, %p1044_p7 }
 0x1a4   : > { %v481_v46 = vpop.permute.xlu1 %480 }
 0x1a5   : > { %v487_v48 = vsel %vm486_vm3, 0.0, %v481_v46 }
 0x1a6   : > { %v505_v51 = vrot.slane %v487_v48, 7 }
 0x1a8   : > { %v483_v49 = vpop.permute.xlu1 %482 }
 0x1a9   : > { %v488_v50 = vsel %vm486_vm3, 0.0, %v483_v49 }
 0x1aa   : > { %v502_v52 = vrot.slane %v488_v50, 7 }
 0x1ac   : > { %v509_v53 = vsel %vm495_vm1, %v502_v52, %v505_v51  ;;  %v474_v4 = vpop.permute.xlu1 %473 }
 0x1ad   : > { %v517_v54 = vsel %vm511_vm4, %v500_v37, %v509_v53  ;;  %v479_v13 = vsel %vm477_vm5, %v474_v4, 0.0  ;;  %v991_v53 = vld [vmem:[%s1407_s2] ss:$8 sps:$4 sm:$0xff]  }
 0x1ae   : > { %v520_v57 = vmul.f32 %v519_v29, %v517_v54  ;;  %v535_v31 = vrot.slane %v479_v13, 1  ;;  %v992_v54 = vld [vmem:[%s1407_s2 + $0x14] ss:$8 sps:$4 sm:$0x1f]  }
 0x1b0   : > { %v522_v58 = vadd.f32 %v520_v57, %v491_v56 }
 0x1b2   : > { %v1319_v60 = vadd.f32 %v551_v59, %v522_v58  ;;  %v994_v58 = vld [vmem:[%s1407_s2 + $0x10] ss:$8 sps:$4 sm:$0x1f]  }
 0x1b4   : > { %v867_v62 = vmul.f32 -1.442695, %v1319_v60 }
 0x1c0   : > { %v435_v63 = vpop.xlane.xlu0 %434 }
 0x1c1   : > { %v440_v2 = vmul.f32 0.04, %v435_v63 }
 0x1c3   : > { %v563_v7 = vrot.slane %v440_v2, 7  ;;  %v584_v8 = vrot.slane %v440_v2, 1  ;;  %v557_v27 = vmul.f32 %v556_v14, %v440_v2 }
 0x1c4   : > { %v438_v3 = vpop.xlane.xlu0 %437 }
 0x1c5   : > { %v441_v5 = vmul.f32 0.04, %v438_v3 }
 0x1c7   : > { %v560_v9 = vrot.slane %v441_v5, 7  ;;  %v585_v10 = vrot.slane %v441_v5, 1  ;;  %v558_v17 = vmul.f32 %v556_v14, %v441_v5 }
 0x1c8   : > { %v472_v16 = vpop.permute.xlu0 %471 }
 0x1c9   : > { %v564_v18 = vsel %vm495_vm1, %v563_v7, %v560_v9  ;;  %v567_v21 = vsel %vm495_vm1, %v560_v9, %v563_v7  ;;  %v590_v22 = vsel %vm524_vm2, %v585_v10, %v584_v8  ;;  %v586_v25 = vsel %vm524_vm2, %v584_v8, %v585_v10 }
 0x1ca   : > { %v577_v23 = vsel %vm570_vm6, %v567_v21, 0.0  ;;  %v581_v24 = vmul.f32 %v579_v6, %v564_v18  ;;  %v601_v26 = vsel %vm596_vm7, %v590_v22, 0.0  ;;  %v478_v30 = vsel %vm477_vm5, %v472_v16, 0.0 }
 0x1cb   : > { %v580_v28 = vmul.f32 %v579_v6, %v577_v23  ;;  %v604_v29 = vmul.f32 %v602_v15, %v601_v26  ;;  %v534_v33 = vrot.slane %v478_v30, 1  ;;  %v603_v34 = vmul.f32 %v602_v15, %v586_v25 }
 0x1cc   : > { %v583_v32 = vadd.f32 %v581_v24, %v558_v17 }
 0x1cd   : > { %v582_v35 = vadd.f32 %v580_v28, %v557_v27  ;;  %v540_v37 = vsel %vm524_vm2, %v535_v31, %v534_v33 }
 0x1ce   : > { %v606_v36 = vadd.f32 %v604_v29, %v583_v32  ;;  %v549_v38 = vsel %vm543_vm8, %v1311_v40, %v540_v37  ;;  %v989_v40 = vld [vmem:[%s1407_s2 + $0x4] ss:$8 sps:$4 sm:$0xff]  }
 0x1cf   : > { %v605_v39 = vadd.f32 %v603_v34, %v582_v35  ;;  %v552_v43 = vmul.f32 %v550_v55, %v549_v38  ;;  %683 = vmatprep.subr.bf16.mxu1 %v989_v40  ;;  %v1118_v55 = vmov 65535  }
 0x1d0   : > { %v866_v41 = vmul.f32 -1.442695, %v606_v36  ;;  %v675_v56 = vsel %vm673_vm9, 4294967295, %v1118_v55  ;;  %684 = vmatpush1.bf16.msra.mxu1 %v991_v53 }
 0x1d1   : > { %v865_v44 = vmul.f32 -1.442695, %v605_v39  ;;  %v554_v45 = vadd.f32 %v552_v43, %v1313_v42  ;;  %v676_v57 = vsel %vm674_vm10, %v675_v56, 0 }
 0x1d2   : > { %995 = vpow2.f32 %v866_v41  ;;  %v681_v59 = vand.u32 %v992_v54, %v676_v57  ;;  %v678_v61 = vand.u32 %v994_v58, %v676_v57 }
 0x1d3   : > { %997 = vpow2.f32 %v865_v44  ;;  %v868_v63 = vmul.f32 -1.442695, %v554_v45 }
 0x1d4   : > { %685 = vmatprep.subr.bf16.mxu1 %v681_v59 }
 0x1d5   : > { %686 = vmatpush1.bf16.msra.mxu1 %v678_v61 }
 0x1dc   : > { %v996_v46 = vpop.eup %995 }
 0x1dd   : > { %v998_v47 = vpop.eup %997  ;;  %v614_v49 = vadd.f32 1.0, %v996_v46 }
 0x1de   : > { %v613_v48 = vadd.f32 1.0, %v998_v47 }
 0x1e0   : > { %999 = vrcp.f32 %v613_v48 }
 0x1e1   : > { %1001 = vrcp.f32 %v614_v49 }
 0x1e2   : > { %1003 = vpow2.f32 %v867_v62 }
 0x1e3   : > { %1005 = vpow2.f32 %v868_v63 }
 0x1ea   : > { %v1000_v50 = vpop.eup %999 }
 0x1eb   : > { %v619_v51 = vmul.f32 0.5, %v1000_v50  ;;  %v1002_v52 = vpop.eup %1001 }
 0x1ec   : > { %v620_v42 = vmul.f32 0.5, %v1002_v52  ;;  %v1004_v0 = vpop.eup %1003 }
 0x1ed   : > { %637 = vperm.xlu1 %971, %v619_v51   ;;  %v1006_v1 = vpop.eup %1005  ;;  %v627_v2 = vadd.f32 1.0, %v1004_v0 }
 0x1ee   : > { %v628_v3 = vadd.f32 1.0, %v1006_v1 }
 0x1ef   : > { %1007 = vrcp.f32 %v627_v2 }
 0x1f0   : > { %1009 = vrcp.f32 %v628_v3 }
 0x1f1   : > { %642 = vperm.xlu1 %971, %v620_v42  }
 0x1f9   : > { %v1008_v4 = vpop.eup %1007 }
 0x1fa   : > { %v1010_v5 = vpop.eup %1009  ;;  %v633_v7 = vmul.f32 0.5, %v1008_v4 }
 0x1fb   : > { %v634_v8 = vmul.f32 0.5, %v1010_v5 }
 0x26c   : > { %v638_v6 = vpop.permute.xlu1 %637 }
 0x26d   : > { %v645_v10 = vadd.f32 %v638_v6, %v633_v7 }
 0x270   : > { %v643_v9 = vpop.permute.xlu1 %642 }
 0x271   : > { %v646_v13 = vadd.f32 %v643_v9, %v634_v8 }
 0x273   : > { %v647_v60 = vpack.c.bf16 %v646_v13, %v645_v10 }
 0x275   : > { %873 = vmatmul.mubr.msk.bf16.vlgmr.msra.gmra.mrb[0].mxu1 %vm432_vm0, %v647_v60 }
 0x348   : > { %v717_v14 = vpop.f32.mrb[0].mxu1 }
 0x349   : > { %v726_v15 = vmul.f32 %v717_v14, %v1293_v19  ;;  %v719_v16 = vpop.f32.mrb[1].mxu1 }
 0x34a   : > { %v727_v17 = vmul.f32 %v719_v16, %v1272_v11  ;;  %v721_v18 = vpop.f32.mrb[2].mxu1 }
 0x34b   : > { %730 = vst [vmem:[%s247_s8] sm:$0xff] %v726_v15  ;;  %v728_v21 = vmul.f32 %v721_v18, %v1295_v20  ;;  %v723_v22 = vpop.f32.mrb[3].mxu1 }
 0x34c   : > { %731 = vst [vmem:[%s247_s8 + $0x8] sm:$0xff] %v727_v17  ;;  %v729_v23 = vmul.f32 %v723_v22, %v1274_v12 }
 0x34d   : > { %732 = vst [vmem:[%s247_s8 + $0x10] sm:$0xff] %v728_v21 }
 0x34e   : > { %733 = vst [vmem:[%s247_s8 + $0x18] sm:$0xff] %v729_v23 }
 0x34f   : > { %1054 = shalt.err (!%p1051_p1)
}
 0x350   : > { %s1055_s23 = scalar_lea.hbm %s1362_s13, 512  ;;  %s1059_s6 = scalar_lea.hbm %s1410_s5, 1024 }
 0x351   : > { %p1056_p2 = scmp.ne.s32.totalorder %s1362_s13, %s1055_s23  ;;  %p1060_p9 = scmp.lt.u32.totalorder %s1362_s13, %s1410_s5 }
 0x352   : > { %p1061_p5 = scmp.lt.u32.totalorder %s1059_s6, %s1055_s23  ;;  %p1063_p10 = scmp.lt.u32.totalorder %s1055_s23, %s1362_s13 }
 0x353   : > { %p1057_p3 = pnand %p1056_p2, %p1423_p12 }
 0x354   : > { %p1062_p6 = por %p1061_p5, %p1060_p9 }
 0x355   : > { %p1058_p4 = pneg %p1057_p3 }
 0x356   : > { %p1064_p0 = por %p1063_p10, %p1062_p6 }
 0x358   : > { %p1065_p7 = pnand %p1064_p0, %p1058_p4 }
 0x35a   : > { %1068 = shalt.err (!%p1065_p7)
}
 0x35b   : > { %s1120_s8 = smov 256   ;;  %s1121_s25 = smov 16  }
 0x35c   : > { %913 = dma.vmem_to_hbm [thread:$0]  (%p1423_p12), %s1355_s10, 512, %s1362_s13, %s1364_s22, %s1120_s8, %s1120_s8, %s1121_s25  }
 0x35d PF: > { %p930_p8 = scmp.ge.s32.totalorder %s1111_s21, 2  ;;  %s764_s11 = sand.u32 1, %s1099_s18  }
 0x35e   : > { %p1424_p11 = scmp.ne.s32.totalorder %s1415_s29, 0  ;;  %s765_s12 = scalar_lea.sflag [#allocation3], %s764_s11 }
 0x360   : > { %p923_p13 = pnand %p930_p8, %p1424_p11 }
 0x362   : > { %1094 = dma.done.wait (!%p923_p13), %s765_s12, 512  }
 0x363   : > { %1096 = vsyncadd (!%p923_p13), %s765_s12, 4294966784  ;;  %p17_p1 = scmp.ge.s32.totalorder %s1177_s24, 4   ;;  %s1425_s18 = smov %s1103_s19 }
 0x364   : > { %s1426_s19 = smov %s1107_s20  ;;  %s1427_s20 = smov %s1188_s27 }
 0x365   : > { %s1428_s21 = smov %s1177_s24  ;;  %19 = sbr.rel (!%p17_p1) target bundleno = 5 (0x5), region = 84 }
 0x36c   :  { %770 = vsyncpa [#allocation3], 1 }
 0x36d   :  { %772 = vsyncpa [#allocation3 + $0x1], 1 }
 0x36e   :  { %773 = vsyncpa [#allocation4], 1 }
 0x36f   :  { %775 = vsyncpa [#allocation4 + $0x1], 1 }
 0x370   :  { %776 = vsyncpa [#allocation6], 1 }

// kernel: tpu_custom_call.1
= control target key start
LH: loop header
LB: loop body
LE: loop exit
PB: predicated region body
PF: predicated region fallthrough
CT: control target
= control target key end

     0   :  { %10 = vsyncpa [#allocation4], 0  ;;  %s1405_s0 = inlined_call_operand.vmem [shape: f32[32,256], index: 0, kind: input, shape index: {}]   ;;  %s1406_s1 = inlined_call_operand.vmem [shape: bf16[256,25], index: 1, kind: input, shape index: {}]   ;;  %s1407_s2 = inlined_call_operand.vmem [shape: bf16[25,256], index: 2, kind: input, shape index: {}]   ;;  %s1408_s3 = inlined_call_operand.vmem [shape: f32[1,3], index: 3, kind: input, shape index: {}]   ;;  %s1409_s4 = inlined_call_operand.vmem [shape: f32[1,3], index: 4, kind: input, shape index: {}]   ;;  %s1410_s5 = inlined_call_operand.hbm [shape: f32[32,256], index: 5, kind: output, shape index: {}]  }
   0x1   :  { %11 = vsyncpa [#allocation6], 0 }
   0x2   :  { %12 = vsyncpa [#allocation3], 0 }
   0x3   :  { %14 = vsyncpa [#allocation3 + $0x1], 0  ;;  %s1152_s18 = smov 0   ;;  %s1154_s19 = smov 0  }
   0x4   :  { %s1156_s20 = smov 0   ;;  %s1158_s21 = smov 0  }
   0x5 LB: > { %s1173_s22 = sadd.s32 4294967295, %s1111_s21   ;;  %s833_s23 = sadd.s32 4294967294, %s1111_s21   ;;  %s1111_s21 = sphi %s1158_s21, %s1428_s21   ;;  %s1107_s20 = sphi %s1156_s20, %s1427_s20   ;;  %s1103_s19 = sphi %s1154_s19, %s1426_s19   ;;  %s1099_s18 = sphi %s1152_s18, %s1425_s18  }
   0x6   : > { %s1177_s24 = sadd.s32 1, %s1111_s21   ;;  %s137_s25 = sadd.s32 1, %s1107_s20 }
   0x7   : > { %s134_s26 = ssub.s32 %s1111_s21, %s1177_s24  ;;  %p147_p0 = scmp.ne.s32.totalorder %s1107_s20, %s1103_s19 }
   0x8   : > { %p135_p1 = scmp.eq.s32.totalorder %s134_s26, 0  ;;  %p148_p2 = scmp.eq.s32.totalorder %s1173_s22, 1 }
   0x9   : > { %p153_p3 = scmp.ne.s32.totalorder %s1103_s19, %s1099_s18  ;;  %p154_p4 = scmp.eq.s32.totalorder %s833_s23, 1 }
   0xa   : > { %s1188_s27 = scalar_select %p135_p1, %s1107_s20, %s137_s25  }
   0xb   : > { %p1190_p5 = por %p148_p2, %p147_p0  ;;  %p1194_p6 = por %p154_p4, %p153_p3 }
   0xc   : > { %p834_p7 = scmp.ge.s32.totalorder %s1111_s21, 1  ;;  %p161_p8 = scmp.lt.s32.totalorder %s1111_s21, 3 }
   0xd   : > { %s1414_s28 = scalar_select %p1190_p5, 1, 0 }
   0xe   : > { %s1415_s29 = scalar_select %p1194_p6, 1, 0 }
   0xf   : > { %p1411_p9 = scmp.eq.s32.totalorder %s1173_s22, 0  ;;  %p1201_p10 = pnand %p834_p7, %p161_p8 }
  0x10   : > { %s180_s8 = sshll.u32 %s1408_s3, 4  ;;  %s191_s11 = sshll.u32 %s1409_s4, 4  ;;  %s181_s8 = int_to_ptr.vmem [resolvable:$true] %s180_s8  ;;  %s192_s11 = int_to_ptr.vmem [resolvable:$true] %s191_s11 }
  0x11   : > { %s1416_s30 = scalar_select %p1201_p10, 1, 0 }
  0x12   : > { %p915_p11 = pneg %p1201_p10  ;;  %s1011_s13 = scalar_lea.vmem %s181_s8, 16 }
  0x13   : > { %p1012_p13 = scmp.ne.s32.totalorder %s181_s8, %s1011_s13  ;;  %p1019_p3 = scmp.lt.s32.totalorder %s181_s8, %s181_s8 }
  0x14   : > { %p1215_p12 = pnand %p1411_p9, %p915_p11  ;;  %p1020_p4 = scmp.lt.s32.totalorder %s1011_s13, %s1011_s13 }
  0x16   : > { %p1013_p0 = pneg %p1215_p12  ;;  %p1021_p7 = por %p1020_p4, %p1019_p3 }
  0x18   : > { %p1014_p1 = pnand %p1013_p0, %p1012_p13 }
  0x1a   : > { %p1015_p2 = pneg %p1014_p1 }
  0x1c   : > { %p1022_p8 = pnand %p1021_p7, %p1015_p2 }
  0x1e   : > { %1025 = shalt.err (!%p1022_p8)
}
  0x1f   : > { %s1113_s14 = smov [#allocation2]   ;;  %s1026_s15 = scalar_lea.vmem %s192_s11, 16 }
  0x20   : > { %918 = dma.vmem_to_smem (!%p1215_p12), %s181_s8, 16, %s1113_s14, [#allocation4]  }
  0x21   : > { %p1027_p11 = scmp.ne.s32.totalorder %s192_s11, %s1026_s15  ;;  %p1034_p5 = scmp.lt.s32.totalorder %s192_s11, %s192_s11 }
  0x22   : > { %p1035_p10 = scmp.lt.s32.totalorder %s1026_s15, %s1026_s15 }
  0x23   : > { %p1029_p9 = pnand %p1027_p11, %p1013_p0 }
  0x24   : > { %p1036_p13 = por %p1035_p10, %p1034_p5 }
  0x25   : > { %p1030_p6 = pneg %p1029_p9 }
  0x27   : > { %p1037_p1 = pnand %p1036_p13, %p1030_p6 }
  0x29   : > { %1040 = shalt.err (!%p1037_p1)
}
  0x2a   : > { %s1114_s16 = smov [#allocation5]   ;;  %p1418_p2 = scmp.ne.s32.totalorder %s1416_s30, 0 }
  0x2b   : > { %921 = dma.vmem_to_smem (!%p1215_p12), %s192_s11, 16, %s1114_s16, [#allocation6]  }
  0x2c   : > { %214 = sbr.rel (%p1418_p2) target bundleno = 861 (0x35d), region = 40  ;;  %p1419_p3 = scmp.eq.s32.totalorder (!%p1418_p2), %s1173_s22, 0 }
  0x33   : > { %1086 = dma.done.wait (%p1419_p3), [#allocation4], 16   ;;  %p1420_p4 = pmov %p1419_p3 }
  0x34   : > { %p1421_p9 = pmov %p1419_p3 }
  0x35   : > { %1088 = vsyncadd (%p1420_p4), [#allocation4], 4294967280 }
  0x36   : > { %1090 = dma.done.wait (%p1421_p9), [#allocation6], 16   ;;  %p1422_p5 = pmov %p1419_p3 }
  0x38   : > { %1092 = vsyncadd (%p1422_p5), [#allocation6], 4294967280 }
  0x39   : > { %224 = sfence }
  0x3a   : > { %v973_v0 = vld [vmem:[%s1406_s1 + $0x40] sm:$0xff]   ;;  %s842_s25 = sshll.u32 %s1173_s22, 1  ;;  %v975_v2 = vld [vmem:[%s1406_s1 + $0x48] sm:$0xff]   ;;  %v977_v4 = vld [vmem:[%s1406_s1 + $0x50] sm:$0xff]   ;;  %s1299_s7 = sld [smem:[#allocation2]]  ;;  %vm432_vm0 = vcmask 203776   ;;  %v442_v44 = vlaneseq }
  0x3b   : > { %v974_v1 = vld [vmem:[%s1406_s1] sm:$0xff]   ;;  %883 = vmatprep.subr.bf16.mxu0 %v973_v0  ;;  %p249_p6 = scmp.lt.s32.totalorder %s842_s25, 3  ;;  %v976_v3 = vld [vmem:[%s1406_s1 + $0x8] sm:$0xff]   ;;  %v978_v5 = vld [vmem:[%s1406_s1 + $0x10] sm:$0xff]   ;;  %s1301_s9 = sld [smem:[#allocation2 + $0x1]]  ;;  %vm495_vm1 = vcmask 1040384  }
  0x3c   : > { %884 = vmatpush3.bf16.msra.mxu0 %v974_v1  ;;  %v979_v6 = vld [vmem:[%s1406_s1 + $0x58] sm:$0xff]   ;;  %v981_v8 = vld [vmem:[%s1406_s1 + $0x60] sm:$0xff]   ;;  %v983_v10 = vld [vmem:[%s1406_s1 + $0x68] sm:$0xff]   ;;  %vm524_vm2 = vcmask 1046528   ;;  %s1116_s10 = smov 127   ;;  %v1117_v43 = vmov 0  }
  0x3d   : > { %885 = vmatprep.subr.bf16.mxu0 %v975_v2  ;;  %s1430_s25 = smov (!%p249_p6, %s842_s25), 3  ;;  %v980_v7 = vld [vmem:[%s1406_s1 + $0x18] sm:$0xff]   ;;  %v982_v9 = vld [vmem:[%s1406_s1 + $0x20] sm:$0xff]   ;;  %v984_v14 = vld [vmem:[%s1406_s1 + $0x28] sm:$0xff]   ;;  %971 = vset.pattern.permute.xlu1 %v1117_v43  ;;  %v443_v45 = vshrl.u32 %v442_v44, 7  ;;  %vm486_vm3 = vcmask 7168  }
  0x3e   : > { %s880_s16 = sshll.u32 %s1430_s25, 4  ;;  %v985_v15 = vld [vmem:[%s1406_s1 + $0x70] sm:$0xff]   ;;  %v987_v17 = vld [vmem:[%s1406_s1 + $0x78] sm:$0xff]   ;;  %715 = vmatprep.mubr.bf16.mxu1 %v1117_v43  ;;  %972 = vset.pattern.permute.xlu0 %v1117_v43  ;;  %s1315_s25 = sld [smem:[#allocation2 + $0x2]]  ;;  %vm477_vm5 = vcmask 195584   ;;  %vm673_vm9 = vcmask 1043456  }
  0x3f   : > { %s253_s8 = scalar_lea.vmem %s1405_s0, %s880_s16  ;;  %v986_v16 = vld [vmem:[%s1406_s1 + $0x30] sm:$0xff]   ;;  %v988_v18 = vld [vmem:[%s1406_s1 + $0x38] sm:$0xff]   ;;  %v449_v47 = vand.u32 15, %v443_v45  ;;  %v444_v61 = vadd.s32 8, %v443_v45  ;;  %s1321_s11 = sld [smem:[#allocation5]]  ;;  %vm674_vm10 = vcmask 1044480  }
  0x40   : > { %886 = vmatpush3.bf16.msra.mxu0 %v976_v3  ;;  %v1272_v11 = vld [vmem:[%s253_s8 + $0x8] sm:$0xff]  ;;  %v1274_v12 = vld [vmem:[%s253_s8 + $0x18] sm:$0xff]  ;;  %v1293_v19 = vld [vmem:[%s253_s8] sm:$0xff]  ;;  %v519_v29 = vstv %s1299_s7  ;;  %s863_s12 = sld [smem:[#allocation5 + $0x1]]  ;;  %s1323_s13 = sld [smem:[#allocation5 + $0x2]] }
  0x41   : > { %887 = vmatprep.subr.bf16.mxu0 %v977_v4  ;;  %v262_v13 = vpack.c.bf16 %v1274_v12, %v1272_v11  ;;  %v1295_v20 = vld [vmem:[%s253_s8 + $0x10] sm:$0xff]  ;;  %s1115_s8 = smov 1   ;;  %v490_v34 = vstv %s1301_s9  ;;  %vm511_vm4 = vcmp.ge.s32.totalorder %v449_v47, 1  ;;  %v456_v62 = vand.u32 15, %v444_v61  ;;  %s245_s7 = sand.u32 1, %s1103_s19  }
  0x42   : > { %v261_v21 = vpack.c.bf16 %v1295_v20, %v1293_v19  ;;  %v568_v0 = vadd.s32 4294967295, %v449_v47  ;;  %s841_s9 = sshll.u32 %s245_s7, 5  ;;  %p1423_p12 = scmp.ne.s32.totalorder %s1414_s28, 0 }
  0x43   : > { %423 = vmatprep.mubr.bf16.mxu0 %v262_v13  ;;  %v592_v1 = vadd.s32 1, %v456_v62  ;;  %vm543_vm8 = vcmp.lt.s32.totalorder %v456_v62, 15  ;;  %s1119_s15 = smov [#allocation7]  }
  0x44   : > { %888 = vmatpush3.bf16.msra.mxu0 %v978_v5  ;;  %v550_v55 = vstv %s1315_s25  ;;  %vm570_vm6 = vcmp.ge.s32.totalorder %v568_v0, 0  ;;  %s882_s25 = sshll.u32 %s1173_s22, 9  ;;  %s1364_s22 = scalar_lea.sflag [#allocation3], %s245_s7 }
  0x45   : > { %889 = vmatprep.subr.bf16.mxu0 %v979_v6  ;;  %v579_v6 = vstv %s1321_s11  ;;  %vm596_vm7 = vcmp.lt.s32.totalorder %v592_v1, 16  ;;  %s1045_s16 = sshll.u32 %s1119_s15, 4  ;;  %s1046_s16 = int_to_ptr.vmem [resolvable:$false] %s1045_s16 }
  0x46   : > { %s1047_s17 = scalar_lea.vmem %s1046_s16, 1024 }
  0x48   : > { %890 = vmatpush3.bf16.msra.mxu0 %v980_v7 }
  0x49   : > { %891 = vmatprep.subr.bf16.mxu0 %v981_v8 }
  0x4c   : > { %892 = vmatpush3.bf16.msra.mxu0 %v982_v9 }
  0x4d   : > { %893 = vmatprep.subr.bf16.mxu0 %v983_v10 }
  0x50   : > { %894 = vmatpush3.bf16.msra.mxu0 %v984_v14  ;;  %v556_v14 = vstv %s863_s12 }
  0x51   : > { %895 = vmatprep.subr.bf16.mxu0 %v985_v15  ;;  %v602_v15 = vstv %s1323_s13  ;;  %s1362_s13 = scalar_lea.hbm %s1410_s5, %s882_s25 }
  0x54   : > { %896 = vmatpush3.bf16.msra.mxu0 %v986_v16 }
  0x55   : > { %897 = vmatprep.subr.bf16.mxu0 %v987_v17 }
  0x58   : > { %898 = vmatpush3.bf16.msra.mxu0 %v988_v18 }
  0x5b   : > { %424 = vmatmul.mubr.bf16.vlgmr.msra.gmra.mrb[0].mxu0 %v261_v21 }
 0x12e   : > { %v899_v22 = vpop.f32.mrb[0].mxu0 }
 0x12f   : > { %v900_v23 = vpop.f32.mrb[1].mxu0 }
 0x130   : > { %v901_v24 = vadd.f32 %v900_v23, %v899_v22  ;;  %v902_v25 = vpop.f32.mrb[2].mxu0 }
 0x131   : > { %v903_v26 = vpop.f32.mrb[3].mxu0 }
 0x132   : > { %v904_v27 = vadd.f32 %v903_v26, %v902_v25  ;;  %480 = vrot.lane.b32.xlu1 %v901_v24, %s1115_s8  ;;  %v433_v28 = vsel %vm432_vm0, %v901_v24, 0.0  ;;  %v496_v31 = vrot.slane %v901_v24, 7  ;;  %v525_v32 = vrot.slane %v901_v24, 1 }
 0x133   : > { %434 = vadd.xlane.f32.xlu0 %v433_v28  ;;  %v491_v56 = vmul.f32 %v901_v24, %v490_v34 }
 0x134   : > { %v493_v30 = vrot.slane %v904_v27, 7  ;;  %v526_v33 = vrot.slane %v904_v27, 1  ;;  %v436_v35 = vsel %vm432_vm0, %v904_v27, 0.0  ;;  %v492_v41 = vmul.f32 %v904_v27, %v490_v34 }
 0x136   : > { %482 = vrot.lane.b32.xlu1 %v904_v27, %s1115_s8  ;;  %v497_v36 = vsel %vm495_vm1, %v496_v31, %v493_v30  ;;  %v500_v37 = vsel %vm495_vm1, %v493_v30, %v496_v31  ;;  %v527_v38 = vsel %vm524_vm2, %v525_v32, %v526_v33  ;;  %v1311_v40 = vsel %vm524_vm2, %v526_v33, %v525_v32  ;;  %s247_s8 = scalar_lea.vmem [#allocation7], %s841_s9 }
 0x137   : > { %437 = vadd.xlane.f32.xlu0 %v436_v35  ;;  %v521_v39 = vmul.f32 %v519_v29, %v497_v36  ;;  %v551_v59 = vmul.f32 %v550_v55, %v527_v38 }
 0x139   : > { %v1313_v42 = vadd.f32 %v521_v39, %v492_v41 }
 0x13a   : > { %473 = vrot.lane.b32.xlu1 %v904_v27, %s1116_s10 }
 0x14d   : > { %471 = vrot.lane.b32.xlu0 %v901_v24, %s1116_s10  ;;  %s749_s10 = sshll.u32 %s247_s8, 4  ;;  %s1355_s10 = int_to_ptr.vmem [resolvable:$true] %s749_s10 }
 0x14e   : > { %s1041_s14 = scalar_lea.vmem %s1355_s10, 512  ;;  %p1048_p8 = scmp.lt.s32.totalorder %s1355_s10, %s1046_s16 }
 0x14f   : > { %p1042_p10 = scmp.ne.s32.totalorder %s1355_s10, %s1041_s14  ;;  %p1049_p11 = scmp.lt.s32.totalorder %s1047_s17, %s1041_s14 }
 0x151   : > { %p1043_p0 = pnand %p1042_p10, %p1423_p12  ;;  %p1050_p13 = por %p1049_p11, %p1048_p8 }
 0x153   : > { %p1044_p7 = pneg %p1043_p0 }
 0x155   : > { %p1051_p1 = pnand %p1050_p13, %p1044_p7 }
 0x1a4   : > { %v481_v46 = vpop.permute.xlu1 %480 }
 0x1a5   : > { %v487_v48 = vsel %vm486_vm3, 0.0, %v481_v46 }
 0x1a6   : > { %v505_v51 = vrot.slane %v487_v48, 7 }
 0x1a8   : > { %v483_v49 = vpop.permute.xlu1 %482 }
 0x1a9   : > { %v488_v50 = vsel %vm486_vm3, 0.0, %v483_v49 }
 0x1aa   : > { %v502_v52 = vrot.slane %v488_v50, 7 }
 0x1ac   : > { %v509_v53 = vsel %vm495_vm1, %v502_v52, %v505_v51  ;;  %v474_v4 = vpop.permute.xlu1 %473 }
 0x1ad   : > { %v517_v54 = vsel %vm511_vm4, %v500_v37, %v509_v53  ;;  %v479_v13 = vsel %vm477_vm5, %v474_v4, 0.0  ;;  %v991_v53 = vld [vmem:[%s1407_s2] ss:$8 sps:$4 sm:$0xff]  }
 0x1ae   : > { %v520_v57 = vmul.f32 %v519_v29, %v517_v54  ;;  %v535_v31 = vrot.slane %v479_v13, 1  ;;  %v992_v54 = vld [vmem:[%s1407_s2 + $0x14] ss:$8 sps:$4 sm:$0x1f]  }
 0x1b0   : > { %v522_v58 = vadd.f32 %v520_v57, %v491_v56 }
 0x1b2   : > { %v1319_v60 = vadd.f32 %v551_v59, %v522_v58  ;;  %v994_v58 = vld [vmem:[%s1407_s2 + $0x10] ss:$8 sps:$4 sm:$0x1f]  }
 0x1b4   : > { %v867_v62 = vmul.f32 -1.442695, %v1319_v60 }
 0x1c0   : > { %v435_v63 = vpop.xlane.xlu0 %434 }
 0x1c1   : > { %v440_v2 = vmul.f32 0.04, %v435_v63 }
 0x1c3   : > { %v563_v7 = vrot.slane %v440_v2, 7  ;;  %v584_v8 = vrot.slane %v440_v2, 1  ;;  %v557_v27 = vmul.f32 %v556_v14, %v440_v2 }
 0x1c4   : > { %v438_v3 = vpop.xlane.xlu0 %437 }
 0x1c5   : > { %v441_v5 = vmul.f32 0.04, %v438_v3 }
 0x1c7   : > { %v560_v9 = vrot.slane %v441_v5, 7  ;;  %v585_v10 = vrot.slane %v441_v5, 1  ;;  %v558_v17 = vmul.f32 %v556_v14, %v441_v5 }
 0x1c8   : > { %v472_v16 = vpop.permute.xlu0 %471 }
 0x1c9   : > { %v564_v18 = vsel %vm495_vm1, %v563_v7, %v560_v9  ;;  %v567_v21 = vsel %vm495_vm1, %v560_v9, %v563_v7  ;;  %v590_v22 = vsel %vm524_vm2, %v585_v10, %v584_v8  ;;  %v586_v25 = vsel %vm524_vm2, %v584_v8, %v585_v10 }
 0x1ca   : > { %v577_v23 = vsel %vm570_vm6, %v567_v21, 0.0  ;;  %v581_v24 = vmul.f32 %v579_v6, %v564_v18  ;;  %v601_v26 = vsel %vm596_vm7, %v590_v22, 0.0  ;;  %v478_v30 = vsel %vm477_vm5, %v472_v16, 0.0 }
 0x1cb   : > { %v580_v28 = vmul.f32 %v579_v6, %v577_v23  ;;  %v604_v29 = vmul.f32 %v602_v15, %v601_v26  ;;  %v534_v33 = vrot.slane %v478_v30, 1  ;;  %v603_v34 = vmul.f32 %v602_v15, %v586_v25 }
 0x1cc   : > { %v583_v32 = vadd.f32 %v581_v24, %v558_v17 }
 0x1cd   : > { %v582_v35 = vadd.f32 %v580_v28, %v557_v27  ;;  %v540_v37 = vsel %vm524_vm2, %v535_v31, %v534_v33 }
 0x1ce   : > { %v606_v36 = vadd.f32 %v604_v29, %v583_v32  ;;  %v549_v38 = vsel %vm543_vm8, %v1311_v40, %v540_v37  ;;  %v989_v40 = vld [vmem:[%s1407_s2 + $0x4] ss:$8 sps:$4 sm:$0xff]  }
 0x1cf   : > { %v605_v39 = vadd.f32 %v603_v34, %v582_v35  ;;  %v552_v43 = vmul.f32 %v550_v55, %v549_v38  ;;  %683 = vmatprep.subr.bf16.mxu1 %v989_v40  ;;  %v1118_v55 = vmov 65535  }
 0x1d0   : > { %v866_v41 = vmul.f32 -1.442695, %v606_v36  ;;  %v675_v56 = vsel %vm673_vm9, 4294967295, %v1118_v55  ;;  %684 = vmatpush1.bf16.msra.mxu1 %v991_v53 }
 0x1d1   : > { %v865_v44 = vmul.f32 -1.442695, %v605_v39  ;;  %v554_v45 = vadd.f32 %v552_v43, %v1313_v42  ;;  %v676_v57 = vsel %vm674_vm10, %v675_v56, 0 }
 0x1d2   : > { %995 = vpow2.f32 %v866_v41  ;;  %v681_v59 = vand.u32 %v992_v54, %v676_v57  ;;  %v678_v61 = vand.u32 %v994_v58, %v676_v57 }
 0x1d3   : > { %997 = vpow2.f32 %v865_v44  ;;  %v868_v63 = vmul.f32 -1.442695, %v554_v45 }
 0x1d4   : > { %685 = vmatprep.subr.bf16.mxu1 %v681_v59 }
 0x1d5   : > { %686 = vmatpush1.bf16.msra.mxu1 %v678_v61 }
 0x1dc   : > { %v996_v46 = vpop.eup %995 }
 0x1dd   : > { %v998_v47 = vpop.eup %997  ;;  %v614_v49 = vadd.f32 1.0, %v996_v46 }
 0x1de   : > { %v613_v48 = vadd.f32 1.0, %v998_v47 }
 0x1e0   : > { %999 = vrcp.f32 %v613_v48 }
 0x1e1   : > { %1001 = vrcp.f32 %v614_v49 }
 0x1e2   : > { %1003 = vpow2.f32 %v867_v62 }
 0x1e3   : > { %1005 = vpow2.f32 %v868_v63 }
 0x1ea   : > { %v1000_v50 = vpop.eup %999 }
 0x1eb   : > { %v619_v51 = vmul.f32 0.5, %v1000_v50  ;;  %v1002_v52 = vpop.eup %1001 }
 0x1ec   : > { %v620_v42 = vmul.f32 0.5, %v1002_v52  ;;  %v1004_v0 = vpop.eup %1003 }
 0x1ed   : > { %637 = vperm.xlu1 %971, %v619_v51   ;;  %v1006_v1 = vpop.eup %1005  ;;  %v627_v2 = vadd.f32 1.0, %v1004_v0 }
 0x1ee   : > { %v628_v3 = vadd.f32 1.0, %v1006_v1 }
 0x1ef   : > { %1007 = vrcp.f32 %v627_v2 }
 0x1f0   : > { %1009 = vrcp.f32 %v628_v3 }
 0x1f1   : > { %642 = vperm.xlu1 %971, %v620_v42  }
 0x1f9   : > { %v1008_v4 = vpop.eup %1007 }
 0x1fa   : > { %v1010_v5 = vpop.eup %1009  ;;  %v633_v7 = vmul.f32 0.5, %v1008_v4 }
 0x1fb   : > { %v634_v8 = vmul.f32 0.5, %v1010_v5 }
 0x26c   : > { %v638_v6 = vpop.permute.xlu1 %637 }
 0x26d   : > { %v645_v10 = vadd.f32 %v638_v6, %v633_v7 }
 0x270   : > { %v643_v9 = vpop.permute.xlu1 %642 }
 0x271   : > { %v646_v13 = vadd.f32 %v643_v9, %v634_v8 }
 0x273   : > { %v647_v60 = vpack.c.bf16 %v646_v13, %v645_v10 }
 0x275   : > { %873 = vmatmul.mubr.msk.bf16.vlgmr.msra.gmra.mrb[0].mxu1 %vm432_vm0, %v647_v60 }
 0x348   : > { %v717_v14 = vpop.f32.mrb[0].mxu1 }
 0x349   : > { %v726_v15 = vmul.f32 %v717_v14, %v1293_v19  ;;  %v719_v16 = vpop.f32.mrb[1].mxu1 }
 0x34a   : > { %v727_v17 = vmul.f32 %v719_v16, %v1272_v11  ;;  %v721_v18 = vpop.f32.mrb[2].mxu1 }
 0x34b   : > { %730 = vst [vmem:[%s247_s8] sm:$0xff] %v726_v15  ;;  %v728_v21 = vmul.f32 %v721_v18, %v1295_v20  ;;  %v723_v22 = vpop.f32.mrb[3].mxu1 }
 0x34c   : > { %731 = vst [vmem:[%s247_s8 + $0x8] sm:$0xff] %v727_v17  ;;  %v729_v23 = vmul.f32 %v723_v22, %v1274_v12 }
 0x34d   : > { %732 = vst [vmem:[%s247_s8 + $0x10] sm:$0xff] %v728_v21 }
 0x34e   : > { %733 = vst [vmem:[%s247_s8 + $0x18] sm:$0xff] %v729_v23 }
 0x34f   : > { %1054 = shalt.err (!%p1051_p1)
}
 0x350   : > { %s1055_s23 = scalar_lea.hbm %s1362_s13, 512  ;;  %s1059_s6 = scalar_lea.hbm %s1410_s5, 1024 }
 0x351   : > { %p1056_p2 = scmp.ne.s32.totalorder %s1362_s13, %s1055_s23  ;;  %p1060_p9 = scmp.lt.u32.totalorder %s1362_s13, %s1410_s5 }
 0x352   : > { %p1061_p5 = scmp.lt.u32.totalorder %s1059_s6, %s1055_s23  ;;  %p1063_p10 = scmp.lt.u32.totalorder %s1055_s23, %s1362_s13 }
 0x353   : > { %p1057_p3 = pnand %p1056_p2, %p1423_p12 }
 0x354   : > { %p1062_p6 = por %p1061_p5, %p1060_p9 }
 0x355   : > { %p1058_p4 = pneg %p1057_p3 }
 0x356   : > { %p1064_p0 = por %p1063_p10, %p1062_p6 }
 0x358   : > { %p1065_p7 = pnand %p1064_p0, %p1058_p4 }
 0x35a   : > { %1068 = shalt.err (!%p1065_p7)
}
 0x35b   : > { %s1120_s8 = smov 256   ;;  %s1121_s25 = smov 16  }
 0x35c   : > { %913 = dma.vmem_to_hbm [thread:$0]  (%p1423_p12), %s1355_s10, 512, %s1362_s13, %s1364_s22, %s1120_s8, %s1120_s8, %s1121_s25  }
 0x35d PF: > { %p930_p8 = scmp.ge.s32.totalorder %s1111_s21, 2  ;;  %s764_s11 = sand.u32 1, %s1099_s18  }
 0x35e   : > { %p1424_p11 = scmp.ne.s32.totalorder %s1415_s29, 0  ;;  %s765_s12 = scalar_lea.sflag [#allocation3], %s764_s11 }
 0x360   : > { %p923_p13 = pnand %p930_p8, %p1424_p11 }
 0x362   : > { %1094 = dma.done.wait (!%p923_p13), %s765_s12, 512  }
 0x363   : > { %1096 = vsyncadd (!%p923_p13), %s765_s12, 4294966784  ;;  %p17_p1 = scmp.ge.s32.totalorder %s1177_s24, 4   ;;  %s1425_s18 = smov %s1103_s19 }
 0x364   : > { %s1426_s19 = smov %s1107_s20  ;;  %s1427_s20 = smov %s1188_s27 }
 0x365   : > { %s1428_s21 = smov %s1177_s24  ;;  %19 = sbr.rel (!%p17_p1) target bundleno = 5 (0x5), region = 84 }
 0x36c   :  { %770 = vsyncpa [#allocation3], 1 }
 0x36d   :  { %772 = vsyncpa [#allocation3 + $0x1], 1 }
 0x36e   :  { %773 = vsyncpa [#allocation4], 1 }
 0x36f   :  { %775 = vsyncpa [#allocation4 + $0x1], 1 }
 0x370   :  { %776 = vsyncpa [#allocation6], 1 }

</bundles_post_ra>
